<compile_context>
chip_gen: v6e
topology: v6e:2x2x1
jax: 0.10.0
libtpu: 0.0.40
codegen_flags: <defaults>
</compile_context>

<pallas_src>
import functools

import jax
import jax.numpy as jnp
from jax.experimental import pallas as pl
from jax.experimental.pallas import tpu as pltpu

_BN_EPS = 1e-5
_LRELU_SLOPE = 0.01          # nn.LeakyReLU default negative_slope


# ----------------------------------------------------------------------------
# Small helpers: VMEM budget + row tiling
# ----------------------------------------------------------------------------
def _round_up(v, m):
    return ((v + m - 1) // m) * m


def _vmem_budget_bytes():
    """Per-kernel VMEM budget from this generation's physical capacity
    (v5e/v6e 128 MiB, v7x 64 MiB); keep half as headroom for compiler
    scratch and pipeline buffers."""
    cap = 64 * 1024 * 1024
    try:
        cap = int(getattr(pltpu.get_tpu_info(), "vmem_capacity_bytes", cap))
    except Exception:
        pass
    return max(16 * 1024 * 1024, min(cap // 2, 64 * 1024 * 1024))


def _row_tiling(M, streamed_row_bytes, resident_bytes, budget):
    """Pick (padded_rows, tile_rows).  Streamed blocks AND the resident
    weight/bias blocks are double-buffered, so both count x2.  Prefers a tile
    dividing M exactly (no jnp.pad pass over the big activations) and >= 2
    grid steps (so v7x's two TensorCores both get work)."""
    avail = max(budget - 2 * resident_bytes - (1 << 20), 2 * 1024 * 1024)
    cap = max(8, (avail // max(2 * streamed_row_bytes, 1)) // 8 * 8)
    cap = min(cap, 1024)
    if M <= 8:
        return M, M                                   # single full-extent block
    upper = min(cap, max(8, (M // 2) // 8 * 8))
    t = upper
    while t >= 8:
        if M % t == 0:
            return M, t
        t -= 8
    # Rare fallback (M not a multiple of 8): pad rows; kernels mask the tail.
    tm = min(cap, 256, _round_up(M, 8))
    return _round_up(M, tm), tm


def _pick_n_tile(N):
    """Tile over points for the finalize kernel: multiple-of-128 divisor of N
    (so the lane-dense output block needs no masking), else full N."""
    for t in (512, 384, 256, 128):
        if N > t and N % t == 0:
            return t
    return N


# ----------------------------------------------------------------------------
# Kernel 1: kNN score + fused top-(k+1) selection (only indices hit HBM)
# ----------------------------------------------------------------------------
def _knn_topk_kernel(q_ref, k_ref, sq_ref, o_ref, *, k, n_keys):
    xq = q_ref[0]                                   # [tq, D]  query tile
    xk = k_ref[0]                                   # [D, N]   all points
    # score = |x_n|^2 - 2 x_q.x_n  ==  squared distance minus the per-query
    # constant |x_q|^2 (cannot change the per-row ordering used for kNN).
    s = sq_ref[0] - 2.0 * jnp.dot(xq, xk, preferred_element_type=jnp.float32)
    tq = s.shape[0]
    col = jax.lax.broadcasted_iota(jnp.int32, (tq, n_keys), 1)
    big = jnp.float32(3.0e38)
    picks = []
    for t in range(k + 1):                          # rank 0 == self -> dropped
        m = jnp.min(s, axis=1, keepdims=True)                       # [tq, 1]
        sel = jnp.min(jnp.where(s <= m, col, n_keys),
                      axis=1, keepdims=True)                        # [tq, 1]
        if t > 0:
            picks.append(sel)
        s = jnp.where(col == sel, big, s)
    o_ref[0] = jnp.concatenate(picks, axis=1)       # [tq, k] int32


def pallas_knn_indices(x, k):
    """x: [B, Fin, N] -> [B, N, k] int32 nearest-neighbour indices (self
    excluded).  Score + top-k fused: no [B, N, N] tensor is materialized."""
    B, D, N = x.shape
    xk = x.astype(jnp.float32)
    xt = jnp.transpose(xk, (0, 2, 1))               # queries [B, N, D]
    sq = jnp.sum(xk * xk, axis=1, keepdims=True)    # key norms [B, 1, N]
    if N <= 128:
        tq, Np = N, N
    else:
        tq = 128
        Np = _round_up(N, tq)
        if Np != N:                                 # pad queries only (cheap)
            xt = jnp.pad(xt, ((0, 0), (0, Np - N), (0, 0)))
    idx = pl.pallas_call(
        functools.partial(_knn_topk_kernel, k=k, n_keys=N),
        out_shape=jax.ShapeDtypeStruct((B, Np, k), jnp.int32),
        grid=(B, Np // tq),
        in_specs=[
            pl.BlockSpec((1, tq, D), lambda b, j: (b, j, 0)),
            pl.BlockSpec((1, D, N), lambda b, j: (b, 0, 0)),   # keys, resident/b
            pl.BlockSpec((1, 1, N), lambda b, j: (b, 0, 0)),   # precomputed |xk|^2
        ],
        out_specs=pl.BlockSpec((1, tq, k), lambda b, j: (b, j, 0)),
        compiler_params=pltpu.CompilerParams(
            dimension_semantics=("parallel", "parallel"),
            vmem_limit_bytes=_vmem_budget_bytes()),
    )(xt, xk, sq)
    return idx[:, :N, :] if Np != N else idx


# ----------------------------------------------------------------------------
# Kernel 2: inte_conv_hk (Conv2d [1, k//2+1]) without im2col
#   + fused per-channel sum / sumsq partials for BatchNorm batch stats
# ----------------------------------------------------------------------------
def _inte_conv_kernel(e_ref, w_ref, b_ref, y_ref, s_ref, q_ref,
                      *, ow, kw, C, Cop, tm, valid_rows):
    w = w_ref[...]                                   # [kw*C, Cop] bf16 resident
    b = b_ref[...]                                   # [1, Cop]    f32
    rmask = None
    if valid_rows is not None:                       # masked padded-row tail
        rid = (pl.program_id(0) * tm
               + jax.lax.broadcasted_iota(jnp.int32, (tm, 1), 0))
        rmask = (rid < valid_rows).astype(jnp.float32)
    psum = jnp.zeros((1, Cop), jnp.float32)
    psq = jnp.zeros((1, Cop), jnp.float32)
    for q in range(ow):                              # static window loop
        win = e_ref[:, q * C:(q + kw) * C]           # [tm, kw*C] in-VMEM slice
        acc = jnp.dot(win, w, preferred_element_type=jnp.float32) + b
        y_ref[:, q * Cop:(q + 1) * Cop] = acc.astype(y_ref.dtype)
        if rmask is not None:
            acc = acc * rmask
        psum = psum + jnp.sum(acc, axis=0, keepdims=True)
        psq = psq + jnp.sum(acc * acc, axis=0, keepdims=True)
    s_ref[0] = psum
    q_ref[0] = psq


# ----------------------------------------------------------------------------
# Kernel 3: conv2 fused GEMM
#   out = ef @ W2a + LeakyReLU(BN_affine(y1)) @ W2b + bias
#   (+ fused per-channel sum / sumsq partials for conv2's BatchNorm)
# ----------------------------------------------------------------------------
def _conv2_fused_kernel(e_ref, a_ref, w1_ref, w2_ref, sc_ref, sh_ref, b_ref,
                        y_ref, s_ref, q_ref, *, slope, tm, valid_rows):
    a = a_ref[...].astype(jnp.float32) * sc_ref[...] + sh_ref[...]   # BN affine
    a = jnp.where(a >= 0, a, slope * a).astype(jnp.bfloat16)         # LeakyReLU
    acc = jnp.dot(e_ref[...], w1_ref[...], preferred_element_type=jnp.float32)
    acc = acc + jnp.dot(a, w2_ref[...], preferred_element_type=jnp.float32)
    acc = acc + b_ref[...]
    y_ref[...] = acc.astype(y_ref.dtype)
    if valid_rows is not None:
        rid = (pl.program_id(0) * tm
               + jax.lax.broadcasted_iota(jnp.int32, (tm, 1), 0))
        acc = acc * (rid < valid_rows).astype(jnp.float32)
    s_ref[0] = jnp.sum(acc, axis=0, keepdims=True)
    q_ref[0] = jnp.sum(acc * acc, axis=0, keepdims=True)


# ----------------------------------------------------------------------------
# Kernel 4: conv2 BatchNorm normalize + ReLU + output permute, fused
#   [tn, N2p] rows -> [2Fout, tn] block of the [B, 2Fout, N] output
# ----------------------------------------------------------------------------
def _bn_relu_permute_kernel(y_ref, sc_ref, sh_ref, o_ref, *, C2):
    z = y_ref[0].astype(jnp.float32) * sc_ref[...] + sh_ref[...]
    z = jnp.maximum(z, 0.0)
    o_ref[0] = jnp.transpose(z[:, :C2])              # XLU transpose; N on lanes


# ----------------------------------------------------------------------------
# Module forward
# ----------------------------------------------------------------------------
def _bn_scale_shift_from_moments(psum, psumsq, count, gamma, beta, eps=_BN_EPS):
    # Moments accumulated in f32 inside the kernels; E[y^2]-E[y]^2 is fine at
    # these activation scales (two-pass would be safer for huge means).
    mean = psum / count
    var = jnp.maximum(psumsq / count - mean * mean, 0.0)
    scale = gamma / jnp.sqrt(var + eps)
    shift = beta - mean * scale
    return scale, shift


def upsample_edgeconv_forward(params, x, Fin, Fout, k):
    """upsample_edgeConv: x [B, Fin, N] -> [B, Fout, 2N]."""
    B, _, N = x.shape
    C = 2 * Fin                 # edge-feature channels
    kw = k // 2 + 1             # inte_conv_hk kernel width
    ow = k // 2                 # inte_conv_hk output width
    Co = 4 * Fin                # inte_conv_hk output channels
    Cop = _round_up(Co, 128)    # lane-dense padded channels (zero weights/bias)
    N2 = 2 * Fout
    N2p = _round_up(N2, 128)
    K2 = ow * Cop
    M = B * N
    budget = _vmem_budget_bytes()

    # ---- kNN edge features, channels-last ([B, N, k, 2Fin], lane-dense) ----
    idx = pallas_knn_indices(x, k)                              # [B, N, k]
    xt = jnp.transpose(x, (0, 2, 1)).astype(jnp.float32)        # [B, N, Fin]
    # TODO(synk): the data-dependent neighbour gather stays in XLA; Pallas TPU
    # has no clean gather primitive at this granularity.
    neigh = jax.vmap(lambda feat, ii: feat[ii])(xt, idx)        # [B, N, k, Fin]
    central = jnp.broadcast_to(xt[:, :, None, :], (B, N, k, Fin))
    ef = jnp.concatenate([central, neigh - central], axis=-1)   # [B, N, k, 2Fin]
    ef_rows = ef.reshape(M, k * C).astype(jnp.bfloat16)

    # ---- fold weights into GEMM layouts (tiny XLA work) ----
    wi = jnp.transpose(params['inte_w'][:, :, 0, :], (2, 1, 0)).reshape(kw * C, Co)
    wi = jnp.pad(wi, ((0, 0), (0, Cop - Co))).astype(jnp.bfloat16)
    bi = jnp.pad(params['inte_b'], (0, Cop - Co)).reshape(1, Cop).astype(jnp.float32)

    w2 = params['conv2_w']                                      # [2Fout, 2Fin, 1, 2k]
    w2a = jnp.transpose(w2[:, :, 0, :k], (2, 1, 0)).reshape(k * C, N2)
    w2a = jnp.pad(w2a, ((0, 0), (0, N2p - N2))).astype(jnp.bfloat16)
    # The transpose/view/permute that builds inte_x and the cat(..., dim=3)
    # are folded into W2b's row layout (column q*Cop + u of y1 == inte_x).
    w2b = jnp.transpose(w2[:, :, 0, k:].reshape(N2, C, 2, ow), (3, 1, 2, 0))
    w2b = jnp.pad(w2b.reshape(ow, Co, N2),
                  ((0, 0), (0, Cop - Co), (0, N2p - N2)))
    w2b = w2b.reshape(K2, N2p).astype(jnp.bfloat16)
    b2 = jnp.pad(params['conv2_b'], (0, N2p - N2)).reshape(1, N2p).astype(jnp.float32)

    g1 = jnp.pad(params['inte_g'], (0, Cop - Co), constant_values=1.0)
    be1 = jnp.pad(params['inte_beta'], (0, Cop - Co))
    g2 = jnp.pad(params['conv2_g'], (0, N2p - N2), constant_values=1.0)
    be2 = jnp.pad(params['conv2_beta'], (0, N2p - N2))

    # ---- shared row tiling (conv2 has the larger footprint; resident x2) ----
    streamed = (2 * k * C + 2 * K2 + 2 * N2p) + 4 * K2 + 4 * N2p
    resident = (2 * (k * C + K2) * N2p + 2 * kw * C * Cop
                + 4 * (2 * K2 + 2 * N2p + 2 * Cop))
    Mp, tm = _row_tiling(M, streamed, resident, budget)
    valid_rows = M if Mp != M else None
    if Mp != M:
        ef_rows = jnp.pad(ef_rows, ((0, Mp - M), (0, 0)))
    G = Mp // tm
    cp = pltpu.CompilerParams(dimension_semantics=("parallel",),
                              vmem_limit_bytes=budget)

    # ---- inte_conv_hk: Conv2d(2Fin, 4Fin, [1, kw]) without im2col ----
    y1, s1, q1 = pl.pallas_call(
        functools.partial(_inte_conv_kernel, ow=ow, kw=kw, C=C, Cop=Cop,
                          tm=tm, valid_rows=valid_rows),
        out_shape=(jax.ShapeDtypeStruct((Mp, K2), jnp.bfloat16),
                   jax.ShapeDtypeStruct((G, 1, Cop), jnp.float32),
                   jax.ShapeDtypeStruct((G, 1, Cop), jnp.float32)),
        grid=(G,),
        in_specs=[pl.BlockSpec((tm, k * C), lambda i: (i, 0)),
                  pl.BlockSpec((kw * C, Cop), lambda i: (0, 0)),   # resident W
                  pl.BlockSpec((1, Cop), lambda i: (0, 0))],       # resident b
        out_specs=(pl.BlockSpec((tm, K2), lambda i: (i, 0)),
                   pl.BlockSpec((1, 1, Cop), lambda i: (i, 0, 0)),
                   pl.BlockSpec((1, 1, Cop), lambda i: (i, 0, 0))),
        compiler_params=cp,
    )(ef_rows, wi, bi)

    sc1, sh1 = _bn_scale_shift_from_moments(
        jnp.sum(s1, axis=(0, 1)), jnp.sum(q1, axis=(0, 1)),
        jnp.float32(M * ow), g1, be1)
    sc1c = jnp.tile(sc1, ow).reshape(1, K2)
    sh1c = jnp.tile(sh1, ow).reshape(1, K2)

    # ---- conv2: Conv2d(2Fin, 2Fout, [1, 2k]) over cat([ef, inte_x], dim=3),
    #      inte's BN affine + LeakyReLU fused as the second-operand prologue --
    y2, s2, q2 = pl.pallas_call(
        functools.partial(_conv2_fused_kernel, slope=_LRELU_SLOPE,
                          tm=tm, valid_rows=valid_rows),
        out_shape=(jax.ShapeDtypeStruct((Mp, N2p), jnp.bfloat16),
                   jax.ShapeDtypeStruct((G, 1, N2p), jnp.float32),
                   jax.ShapeDtypeStruct((G, 1, N2p), jnp.float32)),
        grid=(G,),
        in_specs=[pl.BlockSpec((tm, k * C), lambda i: (i, 0)),
                  pl.BlockSpec((tm, K2), lambda i: (i, 0)),
                  pl.BlockSpec((k * C, N2p), lambda i: (0, 0)),    # resident
                  pl.BlockSpec((K2, N2p), lambda i: (0, 0)),       # resident
                  pl.BlockSpec((1, K2), lambda i: (0, 0)),
                  pl.BlockSpec((1, K2), lambda i: (0, 0)),
                  pl.BlockSpec((1, N2p), lambda i: (0, 0))],
        out_specs=(pl.BlockSpec((tm, N2p), lambda i: (i, 0)),
                   pl.BlockSpec((1, 1, N2p), lambda i: (i, 0, 0)),
                   pl.BlockSpec((1, 1, N2p), lambda i: (i, 0, 0))),
        compiler_params=cp,
    )(ef_rows, y1, w2a, w2b, sc1c, sh1c, b2)

    sc2, sh2 = _bn_scale_shift_from_moments(
        jnp.sum(s2, axis=(0, 1)), jnp.sum(q2, axis=(0, 1)),
        jnp.float32(M), g2, be2)

    # ---- fused BN normalize + ReLU + permute to [B, 2Fout, N] ----
    y2r = (y2[:M] if Mp != M else y2).reshape(B, N, N2p)
    tn = _pick_n_tile(N)
    out3 = pl.pallas_call(
        functools.partial(_bn_relu_permute_kernel, C2=N2),
        out_shape=jax.ShapeDtypeStruct((B, N2, N), jnp.float32),
        grid=(B, N // tn),
        in_specs=[pl.BlockSpec((1, tn, N2p), lambda b, j: (b, j, 0)),
                  pl.BlockSpec((1, N2p), lambda b, j: (0, 0)),
                  pl.BlockSpec((1, N2p), lambda b, j: (0, 0))],
        out_specs=pl.BlockSpec((1, N2, tn), lambda b, j: (b, 0, j)),
        compiler_params=pltpu.CompilerParams(
            dimension_semantics=("parallel", "parallel"),
            vmem_limit_bytes=budget),
    )(y2r, sc2.reshape(1, N2p), sh2.reshape(1, N2p))

    # [B, 2Fout, N] -> [B, Fout, 2N]: contiguous split+merge == free reshape,
    # identical to PyTorch's view(B, Fout, 2, N).view(B, Fout, 2N).
    return out3.reshape(B, Fout, 2 * N)


# ----------------------------------------------------------------------------
# Pure-JAX f32 reference, following the PyTorch graph literally (for checking)
# ----------------------------------------------------------------------------
def reference_forward(params, x, idx, Fin, Fout, k, eps=_BN_EPS):
    B, _, N = x.shape
    neigh = jax.vmap(lambda feat, ii: feat[:, ii])(x, idx)       # [B, Fin, N, k]
    central = jnp.broadcast_to(x[:, :, :, None], (B, Fin, N, k))
    ef = jnp.concatenate([central, neigh - central], axis=1)     # [B, 2Fin, N, k]

    def conv_row(inp, w, b):
        y = jax.lax.conv_general_dilated(
            inp, w, window_strides=(1, 1), padding='VALID',
            dimension_numbers=('NCHW', 'OIHW', 'NCHW'))
        return y + b[None, :, None, None]

    def bn_train(y, g, bt):
        mean = jnp.mean(y, axis=(0, 2, 3), keepdims=True)
        var = jnp.mean(jnp.square(y - mean), axis=(0, 2, 3), keepdims=True)
        return (g[None, :, None, None] * (y - mean) / jnp.sqrt(var + eps)
                + bt[None, :, None, None])

    inte = conv_row(ef, params['inte_w'], params['inte_b'])
    inte = bn_train(inte, params['inte_g'], params['inte_beta'])
    inte = jnp.where(inte >= 0, inte, _LRELU_SLOPE * inte)
    inte = jnp.transpose(inte, (0, 2, 1, 3))                       # [B,N,4Fin,k//2]
    inte = inte.reshape(B, N, 2 * Fin, 2, k // 2).reshape(B, N, 2 * Fin, k)
    inte = jnp.transpose(inte, (0, 2, 1, 3))                       # [B,2Fin,N,k]
    merge = jnp.concatenate([ef, inte], axis=3)                    # [B,2Fin,N,2k]
    y = conv_row(merge, params['conv2_w'], params['conv2_b'])      # [B,2Fout,N,1]
    y = jnp.maximum(bn_train(y, params['conv2_g'], params['conv2_beta']), 0.0)
    return y.reshape(B, Fout, 2, N).reshape(B, Fout, 2 * N)


# ----------------------------------------------------------------------------
# Parameters (PyTorch layouts; BN gamma=1 / beta=0 like a fresh module)
# ----------------------------------------------------------------------------
def init_params(Fin, Fout, k, key):
    kw = k // 2 + 1
    keys = jax.random.split(key, 4)
    w = lambda kk, shape, s=0.1: (s * jax.random.normal(kk, shape)).astype(jnp.float32)
    return {
        # inte_conv_hk: Conv2d(2Fin, 4Fin, [1, kw]) + BatchNorm2d + LeakyReLU
        'inte_w': w(keys[0], (4 * Fin, 2 * Fin, 1, kw)),
        'inte_b': w(keys[1], (4 * Fin,)),
        'inte_g': jnp.ones((4 * Fin,), jnp.float32),
        'inte_beta': jnp.zeros((4 * Fin,), jnp.float32),
        # conv2: conv2dbr(2Fin, 2Fout, [1, 2k]) = Conv2d + BatchNorm2d + ReLU
        'conv2_w': w(keys[2], (2 * Fout, 2 * Fin, 1, 2 * k)),
        'conv2_b': w(keys[3], (2 * Fout,)),
        'conv2_g': jnp.ones((2 * Fout,), jnp.float32),
        'conv2_beta': jnp.zeros((2 * Fout,), jnp.float32),
    }


if __name__ == "__main__":
    B, Fin, Fout, N, k = 2, 4, 8, 16, 4
    key = jax.random.PRNGKey(0)
    kx, kp = jax.random.split(key)
    x = jax.random.normal(kx, (B, Fin, N), dtype=jnp.float32)
    params = init_params(Fin, Fout, k, kp)

    fwd = jax.jit(functools.partial(upsample_edgeconv_forward,
                                    Fin=Fin, Fout=Fout, k=k))
    out = fwd(params, x)
    jax.block_until_ready(out)
    assert out.shape == (B, Fout, 2 * N), out.shape
    assert bool(jnp.all(jnp.isfinite(out)))

    # Cross-check against the pure-JAX f32 reference of the PyTorch graph
    # (same kNN indices; tolerance covers bf16 GEMM operands and bf16 y1/y2).
    idx = pallas_knn_indices(x, k)
    ref = reference_forward(params, x, idx, Fin, Fout, k)
    err = float(jnp.max(jnp.abs(out - ref)))
    assert err < 1e-1, f"max |out - ref| = {err}"

    print("KERNEL_OK")
</pallas_src>

<mosaic_0001>
module attributes {stable_mosaic.version = 11 : i64} {
  func.func @_knn_topk_kernel(%arg0: i32, %arg1: i32, %arg2: memref<1x16x4xf32, #tpu.memory_space<vmem>>, %arg3: memref<1x4x16xf32, #tpu.memory_space<vmem>>, %arg4: memref<1x1x16xf32, #tpu.memory_space<vmem>>, %arg5: memref<1x16x4xi32, #tpu.memory_space<vmem>>) attributes {dimension_semantics = [#tpu.dimension_semantics<parallel>, #tpu.dimension_semantics<parallel>], iteration_bounds = array<i64: 2, 1>, scalar_prefetch = 0 : i64, scratch_operands = 0 : i64, tpu.core_type = #tpu.core_type<tc>, window_params = [{transform_indices = @transform_0, window_bounds = array<i64: 1, 16, 4>}, {transform_indices = @transform_1, window_bounds = array<i64: 1, 4, 16>}, {transform_indices = @transform_2, window_bounds = array<i64: 1, 1, 16>}, {transform_indices = @transform_3, window_bounds = array<i64: 1, 16, 4>}]} {
    %c0 = arith.constant 0 : index
    %c0_0 = arith.constant 0 : index
    %c0_1 = arith.constant 0 : index
    %0 = vector.load %arg2[%c0, %c0_0, %c0_1] : memref<1x16x4xf32, #tpu.memory_space<vmem>>, vector<1x16x4xf32>
    %1 = vector.shape_cast %0 : vector<1x16x4xf32> to vector<16x4xf32>
    %c0_2 = arith.constant 0 : index
    %c0_3 = arith.constant 0 : index
    %c0_4 = arith.constant 0 : index
    %2 = vector.load %arg3[%c0_2, %c0_3, %c0_4] : memref<1x4x16xf32, #tpu.memory_space<vmem>>, vector<1x4x16xf32>
    %3 = vector.shape_cast %2 : vector<1x4x16xf32> to vector<4x16xf32>
    %c0_5 = arith.constant 0 : index
    %c0_6 = arith.constant 0 : index
    %c0_7 = arith.constant 0 : index
    %4 = vector.load %arg4[%c0_5, %c0_6, %c0_7] : memref<1x1x16xf32, #tpu.memory_space<vmem>>, vector<1x1x16xf32>
    %5 = vector.shape_cast %4 : vector<1x1x16xf32> to vector<1x16xf32>
    %cst = arith.constant dense<0.000000e+00> : vector<16x16xf32>
    %6 = tpu.matmul %1, %3, %cst {dimension_numbers = #tpu.dot_dimension_numbers<[1], [0], [0], [1], [0, 0, 1, 1], [], []>} : vector<16x4xf32>, vector<4x16xf32>, vector<16x16xf32> -> vector<16x16xf32>
    %cst_8 = arith.constant 2.000000e+00 : f32
    %7 = vector.broadcast %cst_8 : f32 to vector<16x16xf32>
    %8 = arith.mulf %7, %6 : vector<16x16xf32>
    %9 = vector.broadcast %5 : vector<1x16xf32> to vector<16x16xf32>
    %10 = arith.subf %9, %8 : vector<16x16xf32>
    %11 = tpu.iota {dimensions = array<i32: 1>} : vector<16x16xi32>
    %cst_9 = arith.constant dense<0x7F800000> : vector<16xf32>
    %12 = vector.multi_reduction <minimumf>, %10, %cst_9 [1] : vector<16x16xf32> to vector<16xf32>
    %13 = vector.shape_cast %12 : vector<16xf32> to vector<16x1xf32>
    %14 = vector.broadcast %13 : vector<16x1xf32> to vector<16x16xf32>
    %15 = arith.cmpf ole, %10, %14 : vector<16x16xf32>
    %c16_i32 = arith.constant 16 : i32
    %16 = vector.broadcast %c16_i32 : i32 to vector<16x16xi32>
    %17 = arith.select %15, %11, %16 : vector<16x16xi1>, vector<16x16xi32>
    %cst_10 = arith.constant dense<2147483647> : vector<16xi32>
    %18 = vector.multi_reduction <minsi>, %17, %cst_10 [1] : vector<16x16xi32> to vector<16xi32>
    %19 = vector.shape_cast %18 : vector<16xi32> to vector<16x1xi32>
    %20 = vector.broadcast %19 : vector<16x1xi32> to vector<16x16xi32>
    %21 = arith.cmpi eq, %11, %20 : vector<16x16xi32>
    %cst_11 = arith.constant 3.000000e+38 : f32
    %22 = vector.broadcast %cst_11 : f32 to vector<16x16xf32>
    %23 = arith.select %21, %22, %10 : vector<16x16xi1>, vector<16x16xf32>
    %cst_12 = arith.constant dense<0x7F800000> : vector<16xf32>
    %24 = vector.multi_reduction <minimumf>, %23, %cst_12 [1] : vector<16x16xf32> to vector<16xf32>
    %25 = vector.shape_cast %24 : vector<16xf32> to vector<16x1xf32>
    %26 = vector.broadcast %25 : vector<16x1xf32> to vector<16x16xf32>
    %27 = arith.cmpf ole, %23, %26 : vector<16x16xf32>
    %c16_i32_13 = arith.constant 16 : i32
    %28 = vector.broadcast %c16_i32_13 : i32 to vector<16x16xi32>
    %29 = arith.select %27, %11, %28 : vector<16x16xi1>, vector<16x16xi32>
    %cst_14 = arith.constant dense<2147483647> : vector<16xi32>
    %30 = vector.multi_reduction <minsi>, %29, %cst_14 [1] : vector<16x16xi32> to vector<16xi32>
    %31 = vector.shape_cast %30 : vector<16xi32> to vector<16x1xi32>
    %32 = vector.broadcast %31 : vector<16x1xi32> to vector<16x16xi32>
    %33 = arith.cmpi eq, %11, %32 : vector<16x16xi32>
    %cst_15 = arith.constant 3.000000e+38 : f32
    %34 = vector.broadcast %cst_15 : f32 to vector<16x16xf32>
    %35 = arith.select %33, %34, %23 : vector<16x16xi1>, vector<16x16xf32>
    %cst_16 = arith.constant dense<0x7F800000> : vector<16xf32>
    %36 = vector.multi_reduction <minimumf>, %35, %cst_16 [1] : vector<16x16xf32> to vector<16xf32>
    %37 = vector.shape_cast %36 : vector<16xf32> to vector<16x1xf32>
    %38 = vector.broadcast %37 : vector<16x1xf32> to vector<16x16xf32>
    %39 = arith.cmpf ole, %35, %38 : vector<16x16xf32>
    %c16_i32_17 = arith.constant 16 : i32
    %40 = vector.broadcast %c16_i32_17 : i32 to vector<16x16xi32>
    %41 = arith.select %39, %11, %40 : vector<16x16xi1>, vector<16x16xi32>
    %cst_18 = arith.constant dense<2147483647> : vector<16xi32>
    %42 = vector.multi_reduction <minsi>, %41, %cst_18 [1] : vector<16x16xi32> to vector<16xi32>
    %43 = vector.shape_cast %42 : vector<16xi32> to vector<16x1xi32>
    %44 = vector.broadcast %43 : vector<16x1xi32> to vector<16x16xi32>
    %45 = arith.cmpi eq, %11, %44 : vector<16x16xi32>
    %cst_19 = arith.constant 3.000000e+38 : f32
    %46 = vector.broadcast %cst_19 : f32 to vector<16x16xf32>
    %47 = arith.select %45, %46, %35 : vector<16x16xi1>, vector<16x16xf32>
    %cst_20 = arith.constant dense<0x7F800000> : vector<16xf32>
    %48 = vector.multi_reduction <minimumf>, %47, %cst_20 [1] : vector<16x16xf32> to vector<16xf32>
    %49 = vector.shape_cast %48 : vector<16xf32> to vector<16x1xf32>
    %50 = vector.broadcast %49 : vector<16x1xf32> to vector<16x16xf32>
    %51 = arith.cmpf ole, %47, %50 : vector<16x16xf32>
    %c16_i32_21 = arith.constant 16 : i32
    %52 = vector.broadcast %c16_i32_21 : i32 to vector<16x16xi32>
    %53 = arith.select %51, %11, %52 : vector<16x16xi1>, vector<16x16xi32>
    %cst_22 = arith.constant dense<2147483647> : vector<16xi32>
    %54 = vector.multi_reduction <minsi>, %53, %cst_22 [1] : vector<16x16xi32> to vector<16xi32>
    %55 = vector.shape_cast %54 : vector<16xi32> to vector<16x1xi32>
    %56 = vector.broadcast %55 : vector<16x1xi32> to vector<16x16xi32>
    %57 = arith.cmpi eq, %11, %56 : vector<16x16xi32>
    %cst_23 = arith.constant 3.000000e+38 : f32
    %58 = vector.broadcast %cst_23 : f32 to vector<16x16xf32>
    %59 = arith.select %57, %58, %47 : vector<16x16xi1>, vector<16x16xf32>
    %cst_24 = arith.constant dense<0x7F800000> : vector<16xf32>
    %60 = vector.multi_reduction <minimumf>, %59, %cst_24 [1] : vector<16x16xf32> to vector<16xf32>
    %61 = vector.shape_cast %60 : vector<16xf32> to vector<16x1xf32>
    %62 = vector.broadcast %61 : vector<16x1xf32> to vector<16x16xf32>
    %63 = arith.cmpf ole, %59, %62 : vector<16x16xf32>
    %c16_i32_25 = arith.constant 16 : i32
    %64 = vector.broadcast %c16_i32_25 : i32 to vector<16x16xi32>
    %65 = arith.select %63, %11, %64 : vector<16x16xi1>, vector<16x16xi32>
    %cst_26 = arith.constant dense<2147483647> : vector<16xi32>
    %66 = vector.multi_reduction <minsi>, %65, %cst_26 [1] : vector<16x16xi32> to vector<16xi32>
    %67 = vector.shape_cast %66 : vector<16xi32> to vector<16x1xi32>
    %68 = tpu.concatenate %31, %43, %55, %67 in 1 : vector<16x1xi32>, vector<16x1xi32>, vector<16x1xi32>, vector<16x1xi32> -> vector<16x4xi32>
    %c0_27 = arith.constant 0 : index
    %c0_28 = arith.constant 0 : index
    %c0_29 = arith.constant 0 : index
    %69 = vector.load %arg5[%c0_27, %c0_28, %c0_29] : memref<1x16x4xi32, #tpu.memory_space<vmem>>, vector<1x16x4xi32>
    %70 = vector.shape_cast %69 : vector<1x16x4xi32> to vector<16x4xi32>
    %71 = vector.shape_cast %68 : vector<16x4xi32> to vector<1x16x4xi32>
    tpu.vector_store %arg5[%c0_27, %c0_28, %c0_29], %71 {strides = array<i32>} : memref<1x16x4xi32, #tpu.memory_space<vmem>>, vector<1x16x4xi32>,
    return
  }
  func.func @transform_0(%arg0: i32, %arg1: i32) -> (i32, i32, i32) {
    %c0_i32 = arith.constant 0 : i32
    %c0_i32_0 = arith.constant 0 : i32
    return %arg0, %arg1, %c0_i32 : i32, i32, i32
  }
  func.func @transform_1(%arg0: i32, %arg1: i32) -> (i32, i32, i32) {
    %c0_i32 = arith.constant 0 : i32
    %c0_i32_0 = arith.constant 0 : i32
    %c0_i32_1 = arith.constant 0 : i32
    return %arg0, %c0_i32, %c0_i32_0 : i32, i32, i32
  }
  func.func @transform_2(%arg0: i32, %arg1: i32) -> (i32, i32, i32) {
    %c0_i32 = arith.constant 0 : i32
    %c0_i32_0 = arith.constant 0 : i32
    %c0_i32_1 = arith.constant 0 : i32
    return %arg0, %c0_i32, %c0_i32_0 : i32, i32, i32
  }
  func.func @transform_3(%arg0: i32, %arg1: i32) -> (i32, i32, i32) {
    %c0_i32 = arith.constant 0 : i32
    %c0_i32_0 = arith.constant 0 : i32
    return %arg0, %arg1, %c0_i32 : i32, i32, i32
  }
}

module attributes {stable_mosaic.version = 11 : i64} {
  func.func @_inte_conv_kernel(%arg0: i32, %arg1: memref<16x32xbf16, #tpu.memory_space<vmem>>, %arg2: memref<24x128xbf16, #tpu.memory_space<vmem>>, %arg3: memref<1x128xf32, #tpu.memory_space<vmem>>, %arg4: memref<16x256xbf16, #tpu.memory_space<vmem>>, %arg5: memref<1x1x128xf32, #tpu.memory_space<vmem>>, %arg6: memref<1x1x128xf32, #tpu.memory_space<vmem>>) attributes {dimension_semantics = [#tpu.dimension_semantics<parallel>], iteration_bounds = array<i64: 2>, scalar_prefetch = 0 : i64, scratch_operands = 0 : i64, tpu.core_type = #tpu.core_type<tc>, window_params = [{transform_indices = @transform_0, window_bounds = array<i64: 16, 32>}, {pipeline_mode = #tpu.pipeline_mode<synchronous>, transform_indices = @transform_1, window_bounds = array<i64: 24, 128>}, {pipeline_mode = #tpu.pipeline_mode<synchronous>, transform_indices = @transform_2, window_bounds = array<i64: 1, 128>}, {transform_indices = @transform_3, window_bounds = array<i64: 16, 256>}, {transform_indices = @transform_4, window_bounds = array<i64: 1, 1, 128>}, {transform_indices = @transform_5, window_bounds = array<i64: 1, 1, 128>}]} {
    %c0 = arith.constant 0 : index
    %c0_0 = arith.constant 0 : index
    %0 = vector.load %arg2[%c0, %c0_0] : memref<24x128xbf16, #tpu.memory_space<vmem>>, vector<24x128xbf16>
    %c0_1 = arith.constant 0 : index
    %c0_2 = arith.constant 0 : index
    %1 = vector.load %arg3[%c0_1, %c0_2] : memref<1x128xf32, #tpu.memory_space<vmem>>, vector<1x128xf32>
    %cst = arith.constant 0.000000e+00 : f32
    %2 = vector.broadcast %cst : f32 to vector<1x128xf32>
    %cst_3 = arith.constant 0.000000e+00 : f32
    %3 = vector.broadcast %cst_3 : f32 to vector<1x128xf32>
    %c0_4 = arith.constant 0 : index
    %c0_5 = arith.constant 0 : index
    %4 = vector.load %arg1[%c0_4, %c0_5] : memref<16x32xbf16, #tpu.memory_space<vmem>>, vector<16x24xbf16>
    %cst_6 = arith.constant dense<0.000000e+00> : vector<16x128xf32>
    %5 = tpu.matmul %4, %0, %cst_6 {dimension_numbers = #tpu.dot_dimension_numbers<[1], [0], [0], [1], [0, 0, 1, 1], [], []>} : vector<16x24xbf16>, vector<24x128xbf16>, vector<16x128xf32> -> vector<16x128xf32>
    %6 = vector.broadcast %1 : vector<1x128xf32> to vector<16x128xf32>
    %7 = arith.addf %5, %6 : vector<16x128xf32>
    %8 = arith.truncf %7 : vector<16x128xf32> to vector<16x128xbf16>
    %c0_7 = arith.constant 0 : index
    %c0_8 = arith.constant 0 : index
    %9 = vector.load %arg4[%c0_7, %c0_8] : memref<16x256xbf16, #tpu.memory_space<vmem>>, vector<16x128xbf16>
    tpu.vector_store %arg4[%c0_7, %c0_8], %8 {strides = array<i32>} : memref<16x256xbf16, #tpu.memory_space<vmem>>, vector<16x128xbf16>,
    %cst_9 = arith.constant dense<0.000000e+00> : vector<128xf32>
    %10 = vector.multi_reduction <add>, %7, %cst_9 [0] : vector<16x128xf32> to vector<128xf32>
    %11 = vector.shape_cast %10 : vector<128xf32> to vector<1x128xf32>
    %12 = arith.addf %2, %11 : vector<1x128xf32>
    %13 = arith.mulf %7, %7 : vector<16x128xf32>
    %cst_10 = arith.constant dense<0.000000e+00> : vector<128xf32>
    %14 = vector.multi_reduction <add>, %13, %cst_10 [0] : vector<16x128xf32> to vector<128xf32>
    %15 = vector.shape_cast %14 : vector<128xf32> to vector<1x128xf32>
    %16 = arith.addf %3, %15 : vector<1x128xf32>
    %c0_11 = arith.constant 0 : index
    %c8 = arith.constant 8 : index
    %17 = vector.load %arg1[%c0_11, %c8] : memref<16x32xbf16, #tpu.memory_space<vmem>>, vector<16x24xbf16>
    %cst_12 = arith.constant dense<0.000000e+00> : vector<16x128xf32>
    %18 = tpu.matmul %17, %0, %cst_12 {dimension_numbers = #tpu.dot_dimension_numbers<[1], [0], [0], [1], [0, 0, 1, 1], [], []>} : vector<16x24xbf16>, vector<24x128xbf16>, vector<16x128xf32> -> vector<16x128xf32>
    %19 = vector.broadcast %1 : vector<1x128xf32> to vector<16x128xf32>
    %20 = arith.addf %18, %19 : vector<16x128xf32>
    %21 = arith.truncf %20 : vector<16x128xf32> to vector<16x128xbf16>
    %c0_13 = arith.constant 0 : index
    %c128 = arith.constant 128 : index
    %22 = vector.load %arg4[%c0_13, %c128] : memref<16x256xbf16, #tpu.memory_space<vmem>>, vector<16x128xbf16>
    tpu.vector_store %arg4[%c0_13, %c128], %21 {strides = array<i32>} : memref<16x256xbf16, #tpu.memory_space<vmem>>, vector<16x128xbf16>,
    %cst_14 = arith.constant dense<0.000000e+00> : vector<128xf32>
    %23 = vector.multi_reduction <add>, %20, %cst_14 [0] : vector<16x128xf32> to vector<128xf32>
    %24 = vector.shape_cast %23 : vector<128xf32> to vector<1x128xf32>
    %25 = arith.addf %12, %24 : vector<1x128xf32>
    %26 = arith.mulf %20, %20 : vector<16x128xf32>
    %cst_15 = arith.constant dense<0.000000e+00> : vector<128xf32>
    %27 = vector.multi_reduction <add>, %26, %cst_15 [0] : vector<16x128xf32> to vector<128xf32>
    %28 = vector.shape_cast %27 : vector<128xf32> to vector<1x128xf32>
    %29 = arith.addf %16, %28 : vector<1x128xf32>
    %c0_16 = arith.constant 0 : index
    %c0_17 = arith.constant 0 : index
    %c0_18 = arith.constant 0 : index
    %30 = vector.load %arg5[%c0_16, %c0_17, %c0_18] : memref<1x1x128xf32, #tpu.memory_space<vmem>>, vector<1x1x128xf32>
    %31 = vector.shape_cast %30 : vector<1x1x128xf32> to vector<1x128xf32>
    %32 = vector.shape_cast %25 : vector<1x128xf32> to vector<1x1x128xf32>
    tpu.vector_store %arg5[%c0_16, %c0_17, %c0_18], %32 {strides = array<i32>} : memref<1x1x128xf32, #tpu.memory_space<vmem>>, vector<1x1x128xf32>,
    %c0_19 = arith.constant 0 : index
    %c0_20 = arith.constant 0 : index
    %c0_21 = arith.constant 0 : index
    %33 = vector.load %arg6[%c0_19, %c0_20, %c0_21] : memref<1x1x128xf32, #tpu.memory_space<vmem>>, vector<1x1x128xf32>
    %34 = vector.shape_cast %33 : vector<1x1x128xf32> to vector<1x128xf32>
    %35 = vector.shape_cast %29 : vector<1x128xf32> to vector<1x1x128xf32>
    tpu.vector_store %arg6[%c0_19, %c0_20, %c0_21], %35 {strides = array<i32>} : memref<1x1x128xf32, #tpu.memory_space<vmem>>, vector<1x1x128xf32>,
    return
  }
  func.func @transform_0(%arg0: i32) -> (i32, i32) {
    %c0_i32 = arith.constant 0 : i32
    %c0_i32_0 = arith.constant 0 : i32
    return %arg0, %c0_i32 : i32, i32
  }
  func.func @transform_1(%arg0: i32) -> (i32, i32) {
    %c0_i32 = arith.constant 0 : i32
    %c0_i32_0 = arith.constant 0 : i32
    %c0_i32_1 = arith.constant 0 : i32
    return %c0_i32, %c0_i32_0 : i32, i32
  }
  func.func @transform_2(%arg0: i32) -> (i32, i32) {
    %c0_i32 = arith.constant 0 : i32
    %c0_i32_0 = arith.constant 0 : i32
    %c0_i32_1 = arith.constant 0 : i32
    return %c0_i32, %c0_i32_0 : i32, i32
  }
  func.func @transform_3(%arg0: i32) -> (i32, i32) {
    %c0_i32 = arith.constant 0 : i32
    %c0_i32_0 = arith.constant 0 : i32
    return %arg0, %c0_i32 : i32, i32
  }
  func.func @transform_4(%arg0: i32) -> (i32, i32, i32) {
    %c0_i32 = arith.constant 0 : i32
    %c0_i32_0 = arith.constant 0 : i32
    %c0_i32_1 = arith.constant 0 : i32
    return %arg0, %c0_i32, %c0_i32_0 : i32, i32, i32
  }
  func.func @transform_5(%arg0: i32) -> (i32, i32, i32) {
    %c0_i32 = arith.constant 0 : i32
    %c0_i32_0 = arith.constant 0 : i32
    %c0_i32_1 = arith.constant 0 : i32
    return %arg0, %c0_i32, %c0_i32_0 : i32, i32, i32
  }
}

module attributes {stable_mosaic.version = 11 : i64} {
  func.func @_bn_relu_permute_kernel(%arg0: i32, %arg1: i32, %arg2: memref<1x16x128xbf16, #tpu.memory_space<vmem>>, %arg3: memref<1x128xf32, #tpu.memory_space<vmem>>, %arg4: memref<1x128xf32, #tpu.memory_space<vmem>>, %arg5: memref<1x16x16xf32, #tpu.memory_space<vmem>>) attributes {dimension_semantics = [#tpu.dimension_semantics<parallel>, #tpu.dimension_semantics<parallel>], iteration_bounds = array<i64: 2, 1>, scalar_prefetch = 0 : i64, scratch_operands = 0 : i64, tpu.core_type = #tpu.core_type<tc>, window_params = [{transform_indices = @transform_0, window_bounds = array<i64: 1, 16, 128>}, {pipeline_mode = #tpu.pipeline_mode<synchronous>, transform_indices = @transform_1, window_bounds = array<i64: 1, 128>}, {pipeline_mode = #tpu.pipeline_mode<synchronous>, transform_indices = @transform_2, window_bounds = array<i64: 1, 128>}, {transform_indices = @transform_3, window_bounds = array<i64: 1, 16, 16>}]} {
    %c0 = arith.constant 0 : index
    %c0_0 = arith.constant 0 : index
    %c0_1 = arith.constant 0 : index
    %0 = vector.load %arg2[%c0, %c0_0, %c0_1] : memref<1x16x128xbf16, #tpu.memory_space<vmem>>, vector<1x16x128xbf16>
    %1 = vector.shape_cast %0 : vector<1x16x128xbf16> to vector<16x128xbf16>
    %2 = arith.extf %1 : vector<16x128xbf16> to vector<16x128xf32>
    %c0_2 = arith.constant 0 : index
    %c0_3 = arith.constant 0 : index
    %3 = vector.load %arg3[%c0_2, %c0_3] : memref<1x128xf32, #tpu.memory_space<vmem>>, vector<1x128xf32>
    %4 = vector.broadcast %3 : vector<1x128xf32> to vector<16x128xf32>
    %5 = arith.mulf %2, %4 : vector<16x128xf32>
    %c0_4 = arith.constant 0 : index
    %c0_5 = arith.constant 0 : index
    %6 = vector.load %arg4[%c0_4, %c0_5] : memref<1x128xf32, #tpu.memory_space<vmem>>, vector<1x128xf32>
    %7 = vector.broadcast %6 : vector<1x128xf32> to vector<16x128xf32>
    %8 = arith.addf %5, %7 : vector<16x128xf32>
    %cst = arith.constant 0.000000e+00 : f32
    %9 = vector.broadcast %cst : f32 to vector<16x128xf32>
    %10 = arith.maximumf %8, %9 : vector<16x128xf32>
    %11 = vector.extract_strided_slice %10 {offsets = [0, 0], sizes = [16, 16], strides = [1, 1]} : vector<16x128xf32> to vector<16x16xf32>
    %12 = tpu.transpose %11, [1, 0] : vector<16x16xf32> -> vector<16x16xf32>
    %c0_6 = arith.constant 0 : index
    %c0_7 = arith.constant 0 : index
    %c0_8 = arith.constant 0 : index
    %13 = vector.load %arg5[%c0_6, %c0_7, %c0_8] : memref<1x16x16xf32, #tpu.memory_space<vmem>>, vector<1x16x16xf32>
    %14 = vector.shape_cast %13 : vector<1x16x16xf32> to vector<16x16xf32>
    %15 = vector.shape_cast %12 : vector<16x16xf32> to vector<1x16x16xf32>
    tpu.vector_store %arg5[%c0_6, %c0_7, %c0_8], %15 {strides = array<i32>} : memref<1x16x16xf32, #tpu.memory_space<vmem>>, vector<1x16x16xf32>,
    return
  }
  func.func @transform_0(%arg0: i32, %arg1: i32) -> (i32, i32, i32) {
    %c0_i32 = arith.constant 0 : i32
    %c0_i32_0 = arith.constant 0 : i32
    return %arg0, %arg1, %c0_i32 : i32, i32, i32
  }
  func.func @transform_1(%arg0: i32, %arg1: i32) -> (i32, i32) {
    %c0_i32 = arith.constant 0 : i32
    %c0_i32_0 = arith.constant 0 : i32
    %c0_i32_1 = arith.constant 0 : i32
    return %c0_i32, %c0_i32_0 : i32, i32
  }
  func.func @transform_2(%arg0: i32, %arg1: i32) -> (i32, i32) {
    %c0_i32 = arith.constant 0 : i32
    %c0_i32_0 = arith.constant 0 : i32
    %c0_i32_1 = arith.constant 0 : i32
    return %c0_i32, %c0_i32_0 : i32, i32
  }
  func.func @transform_3(%arg0: i32, %arg1: i32) -> (i32, i32, i32) {
    %c0_i32 = arith.constant 0 : i32
    %c0_i32_0 = arith.constant 0 : i32
    return %arg0, %c0_i32, %arg1 : i32, i32, i32
  }
}

module attributes {stable_mosaic.version = 11 : i64} {
  func.func @_conv2_fused_kernel(%arg0: i32, %arg1: memref<16x32xbf16, #tpu.memory_space<vmem>>, %arg2: memref<16x256xbf16, #tpu.memory_space<vmem>>, %arg3: memref<32x128xbf16, #tpu.memory_space<vmem>>, %arg4: memref<256x128xbf16, #tpu.memory_space<vmem>>, %arg5: memref<1x256xf32, #tpu.memory_space<vmem>>, %arg6: memref<1x256xf32, #tpu.memory_space<vmem>>, %arg7: memref<1x128xf32, #tpu.memory_space<vmem>>, %arg8: memref<16x128xbf16, #tpu.memory_space<vmem>>, %arg9: memref<1x1x128xf32, #tpu.memory_space<vmem>>, %arg10: memref<1x1x128xf32, #tpu.memory_space<vmem>>) attributes {dimension_semantics = [#tpu.dimension_semantics<parallel>], iteration_bounds = array<i64: 2>, scalar_prefetch = 0 : i64, scratch_operands = 0 : i64, tpu.core_type = #tpu.core_type<tc>, window_params = [{transform_indices = @transform_0, window_bounds = array<i64: 16, 32>}, {transform_indices = @transform_1, window_bounds = array<i64: 16, 256>}, {pipeline_mode = #tpu.pipeline_mode<synchronous>, transform_indices = @transform_2, window_bounds = array<i64: 32, 128>}, {pipeline_mode = #tpu.pipeline_mode<synchronous>, transform_indices = @transform_3, window_bounds = array<i64: 256, 128>}, {pipeline_mode = #tpu.pipeline_mode<synchronous>, transform_indices = @transform_4, window_bounds = array<i64: 1, 256>}, {pipeline_mode = #tpu.pipeline_mode<synchronous>, transform_indices = @transform_5, window_bounds = array<i64: 1, 256>}, {pipeline_mode = #tpu.pipeline_mode<synchronous>, transform_indices = @transform_6, window_bounds = array<i64: 1, 128>}, {transform_indices = @transform_7, window_bounds = array<i64: 16, 128>}, {transform_indices = @transform_8, window_bounds = array<i64: 1, 1, 128>}, {transform_indices = @transform_9, window_bounds = array<i64: 1, 1, 128>}]} {
    %c0 = arith.constant 0 : index
    %c0_0 = arith.constant 0 : index
    %0 = vector.load %arg2[%c0, %c0_0] : memref<16x256xbf16, #tpu.memory_space<vmem>>, vector<16x256xbf16>
    %1 = arith.extf %0 : vector<16x256xbf16> to vector<16x256xf32>
    %c0_1 = arith.constant 0 : index
    %c0_2 = arith.constant 0 : index
    %2 = vector.load %arg5[%c0_1, %c0_2] : memref<1x256xf32, #tpu.memory_space<vmem>>, vector<1x256xf32>
    %3 = vector.broadcast %2 : vector<1x256xf32> to vector<16x256xf32>
    %4 = arith.mulf %1, %3 : vector<16x256xf32>
    %c0_3 = arith.constant 0 : index
    %c0_4 = arith.constant 0 : index
    %5 = vector.load %arg6[%c0_3, %c0_4] : memref<1x256xf32, #tpu.memory_space<vmem>>, vector<1x256xf32>
    %6 = vector.broadcast %5 : vector<1x256xf32> to vector<16x256xf32>
    %7 = arith.addf %4, %6 : vector<16x256xf32>
    %cst = arith.constant 0.000000e+00 : f32
    %8 = vector.broadcast %cst : f32 to vector<16x256xf32>
    %9 = arith.cmpf oge, %7, %8 : vector<16x256xf32>
    %cst_5 = arith.constant 0.00999999977 : f32
    %10 = vector.broadcast %cst_5 : f32 to vector<16x256xf32>
    %11 = arith.mulf %10, %7 : vector<16x256xf32>
    %12 = arith.select %9, %7, %11 : vector<16x256xi1>, vector<16x256xf32>
    %13 = arith.truncf %12 : vector<16x256xf32> to vector<16x256xbf16>
    %c0_6 = arith.constant 0 : index
    %c0_7 = arith.constant 0 : index
    %14 = vector.load %arg1[%c0_6, %c0_7] : memref<16x32xbf16, #tpu.memory_space<vmem>>, vector<16x32xbf16>
    %c0_8 = arith.constant 0 : index
    %c0_9 = arith.constant 0 : index
    %15 = vector.load %arg3[%c0_8, %c0_9] : memref<32x128xbf16, #tpu.memory_space<vmem>>, vector<32x128xbf16>
    %cst_10 = arith.constant dense<0.000000e+00> : vector<16x128xf32>
    %16 = tpu.matmul %14, %15, %cst_10 {dimension_numbers = #tpu.dot_dimension_numbers<[1], [0], [0], [1], [0, 0, 1, 1], [], []>} : vector<16x32xbf16>, vector<32x128xbf16>, vector<16x128xf32> -> vector<16x128xf32>
    %c0_11 = arith.constant 0 : index
    %c0_12 = arith.constant 0 : index
    %17 = vector.load %arg4[%c0_11, %c0_12] : memref<256x128xbf16, #tpu.memory_space<vmem>>, vector<256x128xbf16>
    %cst_13 = arith.constant dense<0.000000e+00> : vector<16x128xf32>
    %18 = tpu.matmul %13, %17, %cst_13 {dimension_numbers = #tpu.dot_dimension_numbers<[1], [0], [0], [1], [0, 0, 1, 1], [], []>} : vector<16x256xbf16>, vector<256x128xbf16>, vector<16x128xf32> -> vector<16x128xf32>
    %19 = arith.addf %16, %18 : vector<16x128xf32>
    %c0_14 = arith.constant 0 : index
    %c0_15 = arith.constant 0 : index
    %20 = vector.load %arg7[%c0_14, %c0_15] : memref<1x128xf32, #tpu.memory_space<vmem>>, vector<1x128xf32>
    %21 = vector.broadcast %20 : vector<1x128xf32> to vector<16x128xf32>
    %22 = arith.addf %19, %21 : vector<16x128xf32>
    %23 = arith.truncf %22 : vector<16x128xf32> to vector<16x128xbf16>
    %c0_16 = arith.constant 0 : index
    %c0_17 = arith.constant 0 : index
    %24 = vector.load %arg8[%c0_16, %c0_17] : memref<16x128xbf16, #tpu.memory_space<vmem>>, vector<16x128xbf16>
    tpu.vector_store %arg8[%c0_16, %c0_17], %23 {strides = array<i32>} : memref<16x128xbf16, #tpu.memory_space<vmem>>, vector<16x128xbf16>,
    %cst_18 = arith.constant dense<0.000000e+00> : vector<128xf32>
    %25 = vector.multi_reduction <add>, %22, %cst_18 [0] : vector<16x128xf32> to vector<128xf32>
    %26 = vector.shape_cast %25 : vector<128xf32> to vector<1x128xf32>
    %c0_19 = arith.constant 0 : index
    %c0_20 = arith.constant 0 : index
    %c0_21 = arith.constant 0 : index
    %27 = vector.load %arg9[%c0_19, %c0_20, %c0_21] : memref<1x1x128xf32, #tpu.memory_space<vmem>>, vector<1x1x128xf32>
    %28 = vector.shape_cast %27 : vector<1x1x128xf32> to vector<1x128xf32>
    %29 = vector.shape_cast %26 : vector<1x128xf32> to vector<1x1x128xf32>
    tpu.vector_store %arg9[%c0_19, %c0_20, %c0_21], %29 {strides = array<i32>} : memref<1x1x128xf32, #tpu.memory_space<vmem>>, vector<1x1x128xf32>,
    %30 = arith.mulf %22, %22 : vector<16x128xf32>
    %cst_22 = arith.constant dense<0.000000e+00> : vector<128xf32>
    %31 = vector.multi_reduction <add>, %30, %cst_22 [0] : vector<16x128xf32> to vector<128xf32>
    %32 = vector.shape_cast %31 : vector<128xf32> to vector<1x128xf32>
    %c0_23 = arith.constant 0 : index
    %c0_24 = arith.constant 0 : index
    %c0_25 = arith.constant 0 : index
    %33 = vector.load %arg10[%c0_23, %c0_24, %c0_25] : memref<1x1x128xf32, #tpu.memory_space<vmem>>, vector<1x1x128xf32>
    %34 = vector.shape_cast %33 : vector<1x1x128xf32> to vector<1x128xf32>
    %35 = vector.shape_cast %32 : vector<1x128xf32> to vector<1x1x128xf32>
    tpu.vector_store %arg10[%c0_23, %c0_24, %c0_25], %35 {strides = array<i32>} : memref<1x1x128xf32, #tpu.memory_space<vmem>>, vector<1x1x128xf32>,
    return
  }
  func.func @transform_0(%arg0: i32) -> (i32, i32) {
    %c0_i32 = arith.constant 0 : i32
    %c0_i32_0 = arith.constant 0 : i32
    return %arg0, %c0_i32 : i32, i32
  }
  func.func @transform_1(%arg0: i32) -> (i32, i32) {
    %c0_i32 = arith.constant 0 : i32
    %c0_i32_0 = arith.constant 0 : i32
    return %arg0, %c0_i32 : i32, i32
  }
  func.func @transform_2(%arg0: i32) -> (i32, i32) {
    %c0_i32 = arith.constant 0 : i32
    %c0_i32_0 = arith.constant 0 : i32
    %c0_i32_1 = arith.constant 0 : i32
    return %c0_i32, %c0_i32_0 : i32, i32
  }
  func.func @transform_3(%arg0: i32) -> (i32, i32) {
    %c0_i32 = arith.constant 0 : i32
    %c0_i32_0 = arith.constant 0 : i32
    %c0_i32_1 = arith.constant 0 : i32
    return %c0_i32, %c0_i32_0 : i32, i32
  }
  func.func @transform_4(%arg0: i32) -> (i32, i32) {
    %c0_i32 = arith.constant 0 : i32
    %c0_i32_0 = arith.constant 0 : i32
    %c0_i32_1 = arith.constant 0 : i32
    return %c0_i32, %c0_i32_0 : i32, i32
  }
  func.func @transform_5(%arg0: i32) -> (i32, i32) {
    %c0_i32 = arith.constant 0 : i32
    %c0_i32_0 = arith.constant 0 : i32
    %c0_i32_1 = arith.constant 0 : i32
    return %c0_i32, %c0_i32_0 : i32, i32
  }
  func.func @transform_6(%arg0: i32) -> (i32, i32) {
    %c0_i32 = arith.constant 0 : i32
    %c0_i32_0 = arith.constant 0 : i32
    %c0_i32_1 = arith.constant 0 : i32
    return %c0_i32, %c0_i32_0 : i32, i32
  }
  func.func @transform_7(%arg0: i32) -> (i32, i32) {
    %c0_i32 = arith.constant 0 : i32
    %c0_i32_0 = arith.constant 0 : i32
    return %arg0, %c0_i32 : i32, i32
  }
  func.func @transform_8(%arg0: i32) -> (i32, i32, i32) {
    %c0_i32 = arith.constant 0 : i32
    %c0_i32_0 = arith.constant 0 : i32
    %c0_i32_1 = arith.constant 0 : i32
    return %arg0, %c0_i32, %c0_i32_0 : i32, i32, i32
  }
  func.func @transform_9(%arg0: i32) -> (i32, i32, i32) {
    %c0_i32 = arith.constant 0 : i32
    %c0_i32_0 = arith.constant 0 : i32
    %c0_i32_1 = arith.constant 0 : i32
    return %arg0, %c0_i32, %c0_i32_0 : i32, i32, i32
  }
}

</mosaic_0001>

<bundles_post_ra>
// kernel: upsample_edgeconv_forward.4
= control target key start
LH: loop header
LB: loop body
LE: loop exit
PB: predicated region body
PF: predicated region fallthrough
CT: control target
= control target key end

     0   :  { %s773_s12 = smov 0   ;;  %s775_s13 = smov 0   ;;  %s873_s0 = inlined_call_operand.vmem [shape: f32[2,16,4], index: 0, kind: input, shape index: {}]   ;;  %s874_s1 = inlined_call_operand.vmem [shape: f32[2,4,16], index: 1, kind: input, shape index: {}]   ;;  %s875_s2 = inlined_call_operand.vmem [shape: f32[2,1,16], index: 2, kind: input, shape index: {}]   ;;  %s876_s3 = inlined_call_operand.vmem [shape: s32[2,16,4], index: 3, kind: output, shape index: {}]  }
   0x1   :  { %s777_s14 = smov 0  }
   0x2 LB: > { %s25_s15 = sadd.s32 1, %s747_s13  ;;  %p683_p0 = scmp.ge.s32.totalorder %s751_s14, 1  ;;  %s751_s14 = sphi %s777_s14, %s13_s14   ;;  %s747_s13 = sphi %s775_s13, %s878_s13   ;;  %s743_s12 = sphi %s773_s12, %s877_s12  }
   0x3   : > { %p27_p1 = scmp.ge.s32.totalorder %s25_s15, 2  ;;  %p175_p2 = scmp.lt.s32.totalorder %s751_s14, 3 }
   0x5   : > { %s880_s15 = smov (%p27_p1, %s25_s15), 0  ;;  %p176_p3 = pnand %p683_p0, %p175_p2 }
   0x6   : > { %p215_p4 = scmp.lt.s32.totalorder (!%p176_p3), %s743_s12, 1 }
   0x7   : > { %179 = sbr.rel (%p176_p3) target bundleno = 2371 (0x943), region = 32 }
   0xc   : > { %s882_s12 = smov (!%p215_p4, %s743_s12), 1  ;;  %vm252_vm0 = vcmask 1043456   ;;  %vm245_vm1 = vcmask 31744   ;;  %vm343_vm2 = vcmask 130048   ;;  %v341_v12 = vlaneseq }
   0xd   : > { %s686_s16 = sshll.u32 %s882_s12, 2  ;;  %s695_s17 = sshll.u32 %s882_s12, 4 }
   0xe   : > { %s227_s20 = scalar_lea.vmem %s874_s1, %s686_s16  ;;  %s222_s23 = scalar_lea.vmem %s873_s0, %s695_s17  ;;  %v811_v13 = vand.u32 127, %v341_v12 }
   0xf   : > { %v243_v0 = vld [vmem:[%s227_s20] sm:$0xf]  ;;  %v242_v2 = vld [vmem:[%s222_s23 + $0x8] sm:$0xff]  ;;  %s230_s26 = scalar_lea.vmem %s875_s2, %s882_s12  ;;  %s239_s29 = scalar_lea.vmem %s876_s3, %s695_s17 }
  0x10   : > { %v241_v1 = vld [vmem:[%s222_s23] sm:$0xff]  ;;  %700 = vmatprep.subr.msk.mxu0 %vm252_vm0, %v243_v0 }
  0x11   : > { %702 = vmatprep.mubr.msk.f32.mxu0 %vm245_vm1, %v241_v1  ;;  %701 = vmatpush3.msk.msra.mxu0 %vm252_vm0, %v243_v0  ;;  %v692_v7 = vld [vmem:[%s230_s26] ss:$0 sm:$0xff] }
  0x12   : > { %703 = vmatmul.mubr.msk.f32.vlgmr.msra.gmra.mxu0 %vm245_vm1, %v242_v2 }
  0xd2   : > { %v704_v3 = vpop.f32.mrf.mxu0 }
  0xd3   : > { %v332_v5 = vmul.f32 2.0, %v704_v3 }
  0xd4   : > { %v322_v4 = vpop.f32.mrf.mxu0 }
  0xd5   : > { %v331_v6 = vmul.f32 2.0, %v322_v4  ;;  %v340_v9 = vsub.f32 %v692_v7, %v332_v5 }
  0xd7   : > { %v339_v8 = vsub.f32 %v692_v7, %v331_v6  ;;  %v347_v11 = vsel %vm343_vm2, %v340_v9, inf }
  0xd9   : > { %v344_v10 = vsel %vm343_vm2, %v339_v8, inf }
  0xda   : > { %345 = vmin.xlane.f32.xlu0 %v344_v10 }
  0xde   : > { %348 = vmin.xlane.f32.xlu0 %v347_v11 }
 0x163   : > { %v346_v14 = vpop.xlane.xlu0 %345 }
 0x164   : > { %vm350_vm3 = vcmp.le.f32.partialorder %v339_v8, %v346_v14 }
 0x165   : > { %v352_v15 = vsel %vm350_vm3, %v811_v13, 16 }
 0x166   : > { %v354_v16 = vsel %vm343_vm2, %v352_v15, 2147483647 }
 0x167   : > { %v349_v17 = vpop.xlane.xlu0 %348  ;;  %v356_v18 = vshra.s32 %v354_v16, 16  ;;  %v355_v24 = vand.u32 65535, %v354_v16 }
 0x168   : > { %vm351_vm4 = vcmp.le.f32.partialorder %v340_v9, %v349_v17 }
 0x169   : > { %v353_v19 = vsel %vm351_vm4, %v811_v13, 16  ;;  %v358_v20 = vcvt.s32.f32 %v356_v18  ;;  %v357_v26 = vcvt.s32.f32 %v355_v24 }
 0x16a   : > { %v369_v21 = vsel %vm343_vm2, %v353_v19, 2147483647 }
 0x16b   : > { %359 = vmin.xlane.f32.xlu1 %v358_v20  ;;  %v371_v22 = vshra.s32 %v369_v21, 16  ;;  %v370_v27 = vand.u32 65535, %v369_v21 }
 0x16d   : > { %v373_v23 = vcvt.s32.f32 %v371_v22  ;;  %v372_v30 = vcvt.s32.f32 %v370_v27 }
 0x16f   : > { %374 = vmin.xlane.f32.xlu1 %v373_v23 }
 0x1f4   : > { %v360_v25 = vpop.xlane.xlu1 %359 }
 0x1f5   : > { %vm361_vm5 = vcmp.eq.f32.partialorder %v358_v20, %v360_v25  ;;  %v366_v32 = vcvt.f32.s32 %v360_v25 }
 0x1f6   : > { %v362_v28 = vsel %vm361_vm5, %v357_v26, inf }
 0x1f7   : > { %363 = vmin.xlane.f32.xlu0 %v362_v28  ;;  %v367_v34 = vshll.u32 %v366_v32, 16 }
 0x1f8   : > { %v375_v29 = vpop.xlane.xlu1 %374 }
 0x1f9   : > { %vm376_vm6 = vcmp.eq.f32.partialorder %v373_v23, %v375_v29  ;;  %v381_v35 = vcvt.f32.s32 %v375_v29 }
 0x1fa   : > { %v377_v31 = vsel %vm376_vm6, %v372_v30, inf }
 0x1fb   : > { %378 = vmin.xlane.f32.xlu1 %v377_v31  ;;  %v382_v39 = vshll.u32 %v381_v35, 16 }
 0x280   : > { %v364_v33 = vpop.xlane.xlu0 %363 }
 0x281   : > { %v365_v36 = vcvt.f32.s32 %v364_v33 }
 0x283   : > { %v368_v37 = vadd.s32 %v367_v34, %v365_v36 }
 0x284   : > { %v379_v38 = vpop.xlane.xlu1 %378 }
 0x285   : > { %v380_v40 = vcvt.f32.s32 %v379_v38  ;;  %vm384_vm7 = vcmp.eq.s32.totalorder %v811_v13, %v368_v37 }
 0x286   : > { %v386_v41 = vsel %vm384_vm7, 3e+38, %v339_v8 }
 0x287   : > { %v383_v42 = vadd.s32 %v382_v39, %v380_v40  ;;  %v388_v43 = vsel %vm343_vm2, %v386_v41, inf }
 0x288   : > { %389 = vmin.xlane.f32.xlu0 %v388_v43 }
 0x289   : > { %vm385_vm8 = vcmp.eq.s32.totalorder %v811_v13, %v383_v42 }
 0x28a   : > { %v387_v44 = vsel %vm385_vm8, 3e+38, %v340_v9 }
 0x28b   : > { %v391_v45 = vsel %vm343_vm2, %v387_v44, inf }
 0x28c   : > { %392 = vmin.xlane.f32.xlu1 %v391_v45 }
 0x311   : > { %v390_v46 = vpop.xlane.xlu0 %389 }
 0x312   : > { %vm394_vm9 = vcmp.le.f32.partialorder %v386_v41, %v390_v46 }
 0x313   : > { %v396_v47 = vsel %vm394_vm9, %v811_v13, 16 }
 0x314   : > { %v398_v48 = vsel %vm343_vm2, %v396_v47, 2147483647 }
 0x315   : > { %v393_v49 = vpop.xlane.xlu1 %392  ;;  %v400_v50 = vshra.s32 %v398_v48, 16  ;;  %v399_v56 = vand.u32 65535, %v398_v48 }
 0x316   : > { %vm395_vm10 = vcmp.le.f32.partialorder %v387_v44, %v393_v49 }
 0x317   : > { %v397_v51 = vsel %vm395_vm10, %v811_v13, 16  ;;  %v402_v52 = vcvt.s32.f32 %v400_v50  ;;  %v401_v58 = vcvt.s32.f32 %v399_v56 }
 0x318   : > { %v413_v53 = vsel %vm343_vm2, %v397_v51, 2147483647 }
 0x319   : > { %403 = vmin.xlane.f32.xlu0 %v402_v52  ;;  %v415_v54 = vshra.s32 %v413_v53, 16  ;;  %v414_v59 = vand.u32 65535, %v413_v53 }
 0x31b   : > { %v417_v55 = vcvt.s32.f32 %v415_v54  ;;  %v416_v62 = vcvt.s32.f32 %v414_v59 }
 0x31d   : > { %418 = vmin.xlane.f32.xlu1 %v417_v55 }
 0x3a2   : > { %v404_v57 = vpop.xlane.xlu0 %403 }
 0x3a3   : > { %vm405_vm11 = vcmp.eq.f32.partialorder %v402_v52, %v404_v57  ;;  %v410_v0 = vcvt.f32.s32 %v404_v57 }
 0x3a4   : > { %v406_v60 = vsel %vm405_vm11, %v401_v58, inf  ;;  %vm560_vm11 = vcmask 7168  }
 0x3a5   : > { %407 = vmin.xlane.f32.xlu0 %v406_v60  ;;  %v411_v2 = vshll.u32 %v410_v0, 16 }
 0x3a6   : > { %v419_v61 = vpop.xlane.xlu1 %418 }
 0x3a7   : > { %vm420_vm12 = vcmp.eq.f32.partialorder %v417_v55, %v419_v61  ;;  %v425_v3 = vcvt.f32.s32 %v419_v61 }
 0x3a8   : > { %v421_v63 = vsel %vm420_vm12, %v416_v62, inf  ;;  %vm563_vm12 = vcmask 15360  }
 0x3a9   : > { %422 = vmin.xlane.f32.xlu1 %v421_v63  ;;  %v426_v7 = vshll.u32 %v425_v3, 16 }
 0x42e   : > { %v408_v1 = vpop.xlane.xlu0 %407 }
 0x42f   : > { %v409_v4 = vcvt.f32.s32 %v408_v1 }
 0x431   : > { %v825_v5 = vadd.s32 %v411_v2, %v409_v4 }
 0x432   : > { %v423_v6 = vpop.xlane.xlu1 %422 }
 0x433   : > { %v424_v8 = vcvt.f32.s32 %v423_v6  ;;  %vm428_vm13 = vcmp.eq.s32.totalorder %v811_v13, %v825_v5 }
 0x434   : > { %v430_v9 = vsel %vm428_vm13, 3e+38, %v386_v41 }
 0x435   : > { %v829_v10 = vadd.s32 %v426_v7, %v424_v8  ;;  %v432_v11 = vsel %vm343_vm2, %v430_v9, inf }
 0x436   : > { %433 = vmin.xlane.f32.xlu0 %v432_v11 }
 0x437   : > { %vm429_vm14 = vcmp.eq.s32.totalorder %v811_v13, %v829_v10 }
 0x438   : > { %v431_v12 = vsel %vm429_vm14, 3e+38, %v387_v44 }
 0x439   : > { %v435_v14 = vsel %vm343_vm2, %v431_v12, inf }
 0x43a   : > { %436 = vmin.xlane.f32.xlu1 %v435_v14 }
 0x4bf   : > { %v434_v15 = vpop.xlane.xlu0 %433 }
 0x4c0   : > { %vm438_vm15 = vcmp.le.f32.partialorder %v430_v9, %v434_v15 }
 0x4c1   : > { %v440_v16 = vsel %vm438_vm15, %v811_v13, 16 }
 0x4c2   : > { %v442_v17 = vsel %vm343_vm2, %v440_v16, 2147483647 }
 0x4c3   : > { %v437_v18 = vpop.xlane.xlu1 %436  ;;  %v444_v19 = vshra.s32 %v442_v17, 16  ;;  %v443_v25 = vand.u32 65535, %v442_v17 }
 0x4c4   : > { %vm439_vm0 = vcmp.le.f32.partialorder %v431_v12, %v437_v18 }
 0x4c5   : > { %v441_v20 = vsel %vm439_vm0, %v811_v13, 16  ;;  %v446_v21 = vcvt.s32.f32 %v444_v19  ;;  %v445_v27 = vcvt.s32.f32 %v443_v25 }
 0x4c6   : > { %v457_v22 = vsel %vm343_vm2, %v441_v20, 2147483647 }
 0x4c7   : > { %447 = vmin.xlane.f32.xlu0 %v446_v21  ;;  %v459_v23 = vshra.s32 %v457_v22, 16  ;;  %v458_v28 = vand.u32 65535, %v457_v22 }
 0x4c9   : > { %v461_v24 = vcvt.s32.f32 %v459_v23  ;;  %v460_v31 = vcvt.s32.f32 %v458_v28 }
 0x4cb   : > { %462 = vmin.xlane.f32.xlu1 %v461_v24 }
 0x550   : > { %v448_v26 = vpop.xlane.xlu0 %447 }
 0x551   : > { %vm449_vm3 = vcmp.eq.f32.partialorder %v446_v21, %v448_v26  ;;  %v454_v33 = vcvt.f32.s32 %v448_v26 }
 0x552   : > { %v450_v29 = vsel %vm449_vm3, %v445_v27, inf }
 0x553   : > { %451 = vmin.xlane.f32.xlu0 %v450_v29  ;;  %v455_v35 = vshll.u32 %v454_v33, 16 }
 0x554   : > { %v463_v30 = vpop.xlane.xlu1 %462 }
 0x555   : > { %vm464_vm4 = vcmp.eq.f32.partialorder %v461_v24, %v463_v30  ;;  %v469_v36 = vcvt.f32.s32 %v463_v30 }
 0x556   : > { %v465_v32 = vsel %vm464_vm4, %v460_v31, inf }
 0x557   : > { %466 = vmin.xlane.f32.xlu1 %v465_v32  ;;  %v470_v40 = vshll.u32 %v469_v36, 16 }
 0x5dc   : > { %v452_v34 = vpop.xlane.xlu0 %451 }
 0x5dd   : > { %v453_v37 = vcvt.f32.s32 %v452_v34 }
 0x5df   : > { %v456_v38 = vadd.s32 %v455_v35, %v453_v37 }
 0x5e0   : > { %v467_v39 = vpop.xlane.xlu1 %466 }
 0x5e1   : > { %v468_v41 = vcvt.f32.s32 %v467_v39  ;;  %vm472_vm5 = vcmp.eq.s32.totalorder %v811_v13, %v456_v38  ;;  %v561_v8 = vsel %vm560_vm11, %v825_v5, %v456_v38 }
 0x5e2   : > { %v474_v42 = vsel %vm472_vm5, 3e+38, %v430_v9 }
 0x5e3   : > { %v471_v43 = vadd.s32 %v470_v40, %v468_v41  ;;  %v476_v44 = vsel %vm343_vm2, %v474_v42, inf }
 0x5e4   : > { %477 = vmin.xlane.f32.xlu0 %v476_v44 }
 0x5e5   : > { %vm473_vm6 = vcmp.eq.s32.totalorder %v811_v13, %v471_v43  ;;  %v562_v18 = vsel %vm560_vm11, %v829_v10, %v471_v43 }
 0x5e6   : > { %v475_v45 = vsel %vm473_vm6, 3e+38, %v431_v12 }
 0x5e7   : > { %v479_v46 = vsel %vm343_vm2, %v475_v45, inf }
 0x5e8   : > { %480 = vmin.xlane.f32.xlu1 %v479_v46 }
 0x66d   : > { %v478_v47 = vpop.xlane.xlu0 %477 }
 0x66e   : > { %vm482_vm7 = vcmp.le.f32.partialorder %v474_v42, %v478_v47 }
 0x66f   : > { %v484_v48 = vsel %vm482_vm7, %v811_v13, 16 }
 0x670   : > { %v486_v49 = vsel %vm343_vm2, %v484_v48, 2147483647 }
 0x671   : > { %v481_v50 = vpop.xlane.xlu1 %480  ;;  %v488_v51 = vshra.s32 %v486_v49, 16  ;;  %v487_v57 = vand.u32 65535, %v486_v49 }
 0x672   : > { %vm483_vm8 = vcmp.le.f32.partialorder %v475_v45, %v481_v50 }
 0x673   : > { %v485_v52 = vsel %vm483_vm8, %v811_v13, 16  ;;  %v490_v53 = vcvt.s32.f32 %v488_v51  ;;  %v489_v59 = vcvt.s32.f32 %v487_v57 }
 0x674   : > { %v501_v54 = vsel %vm343_vm2, %v485_v52, 2147483647 }
 0x675   : > { %491 = vmin.xlane.f32.xlu0 %v490_v53  ;;  %v503_v55 = vshra.s32 %v501_v54, 16  ;;  %v502_v60 = vand.u32 65535, %v501_v54 }
 0x677   : > { %v505_v56 = vcvt.s32.f32 %v503_v55  ;;  %v504_v63 = vcvt.s32.f32 %v502_v60 }
 0x679   : > { %506 = vmin.xlane.f32.xlu1 %v505_v56 }
 0x6fe   : > { %v492_v58 = vpop.xlane.xlu0 %491 }
 0x6ff   : > { %vm493_vm9 = vcmp.eq.f32.partialorder %v490_v53, %v492_v58  ;;  %v498_v1 = vcvt.f32.s32 %v492_v58 }
 0x700   : > { %v494_v61 = vsel %vm493_vm9, %v489_v59, inf }
 0x701   : > { %495 = vmin.xlane.f32.xlu0 %v494_v61  ;;  %v499_v3 = vshll.u32 %v498_v1, 16 }
 0x702   : > { %v507_v62 = vpop.xlane.xlu1 %506 }
 0x703   : > { %vm508_vm10 = vcmp.eq.f32.partialorder %v505_v56, %v507_v62  ;;  %v513_v4 = vcvt.f32.s32 %v507_v62 }
 0x704   : > { %v509_v0 = vsel %vm508_vm10, %v504_v63, inf }
 0x705   : > { %510 = vmin.xlane.f32.xlu1 %v509_v0  ;;  %v514_v11 = vshll.u32 %v513_v4, 16 }
 0x78a   : > { %v496_v2 = vpop.xlane.xlu0 %495 }
 0x78b   : > { %v497_v6 = vcvt.f32.s32 %v496_v2 }
 0x78d   : > { %v500_v7 = vadd.s32 %v499_v3, %v497_v6 }
 0x78e   : > { %v511_v9 = vpop.xlane.xlu1 %510 }
 0x78f   : > { %v564_v12 = vsel %vm563_vm12, %v561_v8, %v500_v7  ;;  %v512_v14 = vcvt.f32.s32 %v511_v9  ;;  %vm516_vm13 = vcmp.eq.s32.totalorder %v811_v13, %v500_v7 }
 0x790   : > { %v518_v15 = vsel %vm516_vm13, 3e+38, %v474_v42 }
 0x791   : > { %v515_v16 = vadd.s32 %v514_v11, %v512_v14  ;;  %v520_v17 = vsel %vm343_vm2, %v518_v15, inf }
 0x792   : > { %521 = vmin.xlane.f32.xlu0 %v520_v17 }
 0x793   : > { %v565_v19 = vsel %vm563_vm12, %v562_v18, %v515_v16  ;;  %vm517_vm14 = vcmp.eq.s32.totalorder %v811_v13, %v515_v16 }
 0x794   : > { %v519_v20 = vsel %vm517_vm14, 3e+38, %v475_v45 }
 0x795   : > { %v523_v21 = vsel %vm343_vm2, %v519_v20, inf }
 0x796   : > { %524 = vmin.xlane.f32.xlu1 %v523_v21 }
 0x81b   : > { %v522_v5 = vpop.xlane.xlu0 %521 }
 0x81c   : > { %vm526_vm15 = vcmp.le.f32.partialorder %v518_v15, %v522_v5 }
 0x81d   : > { %v528_v22 = vsel %vm526_vm15, %v811_v13, 16 }
 0x81e   : > { %v530_v23 = vsel %vm343_vm2, %v528_v22, 2147483647 }
 0x81f   : > { %v525_v24 = vpop.xlane.xlu1 %524  ;;  %v532_v25 = vshra.s32 %v530_v23, 16  ;;  %v531_v30 = vand.u32 65535, %v530_v23 }
 0x820   : > { %vm527_vm0 = vcmp.le.f32.partialorder %v519_v20, %v525_v24 }
 0x821   : > { %v529_v26 = vsel %vm527_vm0, %v811_v13, 16  ;;  %v534_v10 = vcvt.s32.f32 %v532_v25  ;;  %v533_v32 = vcvt.s32.f32 %v531_v30 }
 0x822   : > { %v545_v27 = vsel %vm343_vm2, %v529_v26, 2147483647  ;;  %vm566_vm2 = vcmask 23552  }
 0x823   : > { %535 = vmin.xlane.f32.xlu0 %v534_v10  ;;  %v547_v28 = vshra.s32 %v545_v27, 16  ;;  %v546_v33 = vand.u32 65535, %v545_v27 }
 0x825   : > { %v549_v29 = vcvt.s32.f32 %v547_v28  ;;  %v548_v36 = vcvt.s32.f32 %v546_v33 }
 0x827   : > { %550 = vmin.xlane.f32.xlu1 %v549_v29 }
 0x8ac   : > { %v536_v31 = vpop.xlane.xlu0 %535 }
 0x8ad   : > { %vm537_vm3 = vcmp.eq.f32.partialorder %v534_v10, %v536_v31  ;;  %v542_v13 = vcvt.f32.s32 %v536_v31 }
 0x8ae   : > { %v538_v34 = vsel %vm537_vm3, %v533_v32, inf }
 0x8af   : > { %539 = vmin.xlane.f32.xlu0 %v538_v34  ;;  %v543_v39 = vshll.u32 %v542_v13, 16 }
 0x8b0   : > { %v551_v35 = vpop.xlane.xlu1 %550 }
 0x8b1   : > { %vm552_vm4 = vcmp.eq.f32.partialorder %v549_v29, %v551_v35  ;;  %v557_v40 = vcvt.f32.s32 %v551_v35 }
 0x8b2   : > { %v553_v37 = vsel %vm552_vm4, %v548_v36, inf }
 0x8b3   : > { %554 = vmin.xlane.f32.xlu1 %v553_v37  ;;  %v558_v44 = vshll.u32 %v557_v40, 16 }
 0x938   : > { %v540_v38 = vpop.xlane.xlu0 %539 }
 0x939   : > { %v541_v41 = vcvt.f32.s32 %v540_v38 }
 0x93b   : > { %v544_v42 = vadd.s32 %v543_v39, %v541_v41 }
 0x93c   : > { %v555_v43 = vpop.xlane.xlu1 %554 }
 0x93d   : > { %v567_v45 = vsel %vm566_vm2, %v564_v12, %v544_v42  ;;  %v556_v46 = vcvt.f32.s32 %v555_v43 }
 0x93e   : > { %569 = vst.msk [vmem:[%s239_s29] sm:$0xff] %vm245_vm1, %v567_v45 }
 0x93f   : > { %v559_v47 = vadd.s32 %v558_v44, %v556_v46 }
 0x941   : > { %v568_v48 = vsel %vm566_vm2, %v565_v19, %v559_v47 }
 0x942   : > { %570 = vst.msk [vmem:[%s239_s29 + $0x8] sm:$0xff] %vm245_vm1, %v568_v48 }
 0x943 PF: > { %s13_s14 = sadd.s32 1, %s751_s14   ;;  %s877_s12 = smov %s747_s13 }
 0x944   : > { %p10_p5 = scmp.ge.s32.totalorder %s13_s14, 4   ;;  %s878_s13 = smov %s880_s15 }
 0x946   :  { %12 = sbr.rel (!%p10_p5) target bundleno = 2 (0x2), region = 68 }

// kernel: tile.13
= control target key start
LH: loop header
LB: loop body
LE: loop exit
PB: predicated region body
PF: predicated region fallthrough
CT: control target
= control target key end

     0   :  { %s22_s0 = inlined_call_operand.vmem [shape: f32[128], index: 0, kind: input, shape index: {}]   ;;  %s23_s1 = inlined_call_operand.vmem [shape: f32[2,128], index: 1, kind: output, shape index: {}]  }
   0x1   :  { %v4_v0 = vld [vmem:[%s22_s0] ss:$0 sm:$0xff] }
   0x2   :  { %5 = vst [vmem:[%s23_s1] sm:$0x3] %v4_v0 }

// kernel: upsample_edgeconv_forward.5
= control target key start
LH: loop header
LB: loop body
LE: loop exit
PB: predicated region body
PF: predicated region fallthrough
CT: control target
= control target key end

     0   :  { %s648_s18 = smov 0   ;;  %s691_s0 = inlined_call_operand.vmem [shape: bf16[32,32], index: 0, kind: input, shape index: {}]   ;;  %s692_s1 = inlined_call_operand.vmem [shape: bf16[24,128], index: 1, kind: input, shape index: {}]   ;;  %s693_s2 = inlined_call_operand.vmem [shape: f32[1,128], index: 2, kind: input, shape index: {}]   ;;  %s694_s3 = inlined_call_operand.vmem [shape: bf16[32,256], index: 3, kind: output, shape index: {0}]   ;;  %s695_s4 = inlined_call_operand.vmem [shape: f32[2,1,128], index: 4, kind: output, shape index: {1}]   ;;  %s696_s5 = inlined_call_operand.vmem [shape: f32[2,1,128], index: 5, kind: output, shape index: {2}]  }
   0x1 LB: > { %s654_s19 = sadd.s32 4294967295, %s613_s18   ;;  %p546_p0 = scmp.ge.s32.totalorder %s613_s18, 1  ;;  %s613_s18 = sphi %s648_s18, %s16_s18  }
   0x2   : > { %p193_p1 = scmp.lt.s32.totalorder %s613_s18, 3 }
   0x4   : > { %p194_p2 = pnand %p546_p0, %p193_p1 }
   0x5   : > { %s547_s20 = sshll.u32 (!%p194_p2), %s654_s19, 1  ;;  %s617_s29 = smov (!%p194_p2), 120  }
   0x6   : > { %197 = sbr.rel (%p194_p2) target bundleno = 349 (0x15d), region = 32  ;;  %p229_p3 = scmp.lt.s32.totalorder (!%p194_p2), %s547_s20, 3 }
   0x7   : > { %p241_p4 = scmp.lt.s32.totalorder (!%p194_p2), %s654_s19, 1 }
   0xb   : > { %vm278_vm0 = vcmask 1043456   ;;  %v615_v0 = vmov 0.0   ;;  %v604_v1 = vld [vmem:[%s692_s1 + $0x8] ss:$0 sps:$4 sm:$0xff]   ;;  %s698_s20 = smov (!%p229_p3, %s547_s20), 3  ;;  %vm616_vm1 = vmmov 0  }
   0xc   : > { %576 = vmatprep.subr.bf16.mxu0 %v615_v0  ;;  %584 = vmatprep.subr.bf16.mxu1 %v615_v0  ;;  %v280_v2 = vsel %vm278_vm0, %v604_v1, 0  ;;  %v605_v3 = vld [vmem:[%s692_s1] sm:$0xff]   ;;  %s548_s25 = sshll.u32 %s698_s20, 2  ;;  %vm274_vm2 = vcmask 195584   ;;  %s565_s7 = sshll.u32 %s698_s20, 3 }
   0xd   : > { %580 = vmatprep.mubr.msk.bf16.mxu0 %vm616_vm1, %v615_v0  ;;  %588 = vmatprep.mubr.msk.bf16.mxu1 %vm616_vm1, %v615_v0  ;;  %s232_s28 = scalar_lea.vmem %s691_s0, %s548_s25  ;;  %v552_v7 = vld [vmem:[%s693_s2] ss:$0 sm:$0xff]  ;;  %s674_s10 = scalar_lea.vmem %s694_s3, %s565_s7 }
   0xe   : > { %577 = vmatpush3.bf16.msra.mxu0 %v280_v2  ;;  %585 = vmatpush3.bf16.msra.mxu1 %v280_v2  ;;  %v603_v4 = vld [vmem:[%s232_s28] sm:$0xff]   ;;  %s700_s19 = smov (!%p241_p4, %s654_s19), 1 }
   0xf   : > { %578 = vmatprep.subr.bf16.mxu0 %v615_v0  ;;  %586 = vmatprep.subr.bf16.mxu1 %v615_v0  ;;  %v606_v5 = vld [vmem:[%s232_s28] sm:$0xff]   ;;  %s243_s13 = scalar_lea.vmem %s695_s4, %s700_s19  ;;  %s246_s16 = scalar_lea.vmem %s696_s5, %s700_s19 }
  0x10   : > { %358 = vrot.lane.b32.xlu0 %v603_v4, %s617_s29 }
  0x12   : > { %579 = vmatpush3.bf16.msra.mxu0 %v605_v3  ;;  %587 = vmatpush3.bf16.msra.mxu1 %v605_v3 }
  0x15   : > { %581 = vmatmul.mubr.msk.bf16.vlgmr.msra.gmra.mxu0 %vm274_vm2, %v606_v5 }
  0x82   : > { %v359_v6 = vpop.permute.xlu0 %358 }
  0x83   : > { %589 = vmatmul.mubr.msk.bf16.vlgmr.msra.gmra.mxu1 %vm274_vm2, %v359_v6 }
  0xd5   : > { %v316_v8 = vpop.f32.mrf.mxu0 }
  0xd6   : > { %v317_v9 = vadd.f32 %v552_v7, %v316_v8 }
  0xd7   : > { %v582_v10 = vpop.f32.mrf.mxu0 }
  0xd8   : > { %v566_v11 = vpack.c.bf16 %v317_v9, %v317_v9  ;;  %v341_v13 = vmul.f32 %v317_v9, %v317_v9 }
  0xd9   : > { %v319_v12 = vpop.f32.mrf.mxu0 }
  0xda   : > { %331 = vst [vmem:[%s674_s10] sm:$0xf] %v566_v11  ;;  %v320_v14 = vadd.f32 %v552_v7, %v319_v12 }
  0xdb   : > { %v583_v15 = vpop.f32.mrf.mxu0 }
  0xdc   : > { %v567_v16 = vpack.c.bf16 %v320_v14, %v320_v14  ;;  %v333_v17 = vadd.f32 %v320_v14, %v317_v9  ;;  %v342_v18 = vmul.f32 %v320_v14, %v320_v14 }
  0xde   : > { %332 = vst [vmem:[%s674_s10 + $0x8] sm:$0xf] %v567_v16  ;;  %v343_v19 = vadd.f32 %v342_v18, %v341_v13  ;;  %v334_v20 = vrot.slane %v333_v17, 4 }
  0xe0   : > { %v344_v22 = vrot.slane %v343_v19, 4  ;;  %v335_v24 = vadd.f32 %v334_v20, %v333_v17 }
  0xe2   : > { %v345_v28 = vadd.f32 %v344_v22, %v343_v19  ;;  %v336_v30 = vrot.slane %v335_v24, 2 }
  0xe4   : > { %v346_v36 = vrot.slane %v345_v28, 2  ;;  %v337_v39 = vadd.f32 %v336_v30, %v335_v24 }
  0xe6   : > { %v347_v42 = vadd.f32 %v346_v36, %v345_v28  ;;  %v338_v45 = vrot.slane %v337_v39, 1 }
  0xe8   : > { %v348_v48 = vrot.slane %v347_v42, 1  ;;  %v339_v51 = vadd.f32 %v338_v45, %v337_v39 }
  0xea   : > { %v349_v54 = vadd.f32 %v348_v48, %v347_v42 }
 0x143   : > { %v397_v21 = vpop.f32.mrf.mxu1 }
 0x144   : > { %v398_v23 = vadd.f32 %v552_v7, %v397_v21 }
 0x145   : > { %v590_v25 = vpop.f32.mrf.mxu1 }
 0x146   : > { %v568_v26 = vpack.c.bf16 %v398_v23, %v398_v23  ;;  %v422_v32 = vmul.f32 %v398_v23, %v398_v23 }
 0x147   : > { %v400_v27 = vpop.f32.mrf.mxu1 }
 0x148   : > { %412 = vst [vmem:[%s674_s10 + $0x4] sm:$0xf] %v568_v26  ;;  %v401_v29 = vadd.f32 %v552_v7, %v400_v27 }
 0x149   : > { %v591_v31 = vpop.f32.mrf.mxu1 }
 0x14a   : > { %v569_v33 = vpack.c.bf16 %v401_v29, %v401_v29  ;;  %v414_v34 = vadd.f32 %v401_v29, %v398_v23  ;;  %v423_v35 = vmul.f32 %v401_v29, %v401_v29 }
 0x14c   : > { %413 = vst [vmem:[%s674_s10 + $0xc] sm:$0xf] %v569_v33  ;;  %v415_v37 = vrot.slane %v414_v34, 4  ;;  %v424_v38 = vadd.f32 %v423_v35, %v422_v32 }
 0x14e   : > { %v416_v40 = vadd.f32 %v415_v37, %v414_v34  ;;  %v425_v41 = vrot.slane %v424_v38, 4 }
 0x150   : > { %v417_v43 = vrot.slane %v416_v40, 2  ;;  %v426_v44 = vadd.f32 %v425_v41, %v424_v38 }
 0x152   : > { %v418_v46 = vadd.f32 %v417_v43, %v416_v40  ;;  %v427_v47 = vrot.slane %v426_v44, 2 }
 0x154   : > { %v419_v49 = vrot.slane %v418_v46, 1  ;;  %v428_v50 = vadd.f32 %v427_v47, %v426_v44 }
 0x156   : > { %v420_v52 = vadd.f32 %v419_v49, %v418_v46  ;;  %v429_v53 = vrot.slane %v428_v50, 1 }
 0x158   : > { %v421_v55 = vadd.f32 %v420_v52, %v339_v51  ;;  %v430_v56 = vadd.f32 %v429_v53, %v428_v50 }
 0x15a   : > { %v431_v57 = vadd.f32 %v430_v56, %v349_v54  ;;  %432 = vst [vmem:[%s243_s13] sm:$0x1] %v421_v55 }
 0x15c   : > { %433 = vst [vmem:[%s246_s16] sm:$0x1] %v431_v57 }
 0x15d PF: > { %s16_s18 = sadd.s32 1, %s613_s18  }
 0x15e   : > { %p13_p5 = scmp.ge.s32.totalorder %s16_s18, 4  }
 0x160   :  { %15 = sbr.rel (!%p13_p5) target bundleno = 1 (0x1), region = 86 }

// kernel: upsample_edgeconv_forward.7
= control target key start
LH: loop header
LB: loop body
LE: loop exit
PB: predicated region body
PF: predicated region fallthrough
CT: control target
= control target key end

     0   :  { %s437_s12 = smov 0   ;;  %s439_s13 = smov 0   ;;  %s476_s0 = inlined_call_operand.vmem [shape: bf16[2,16,128], index: 0, kind: input, shape index: {}]   ;;  %s477_s1 = inlined_call_operand.vmem [shape: f32[1,128], index: 1, kind: input, shape index: {}]   ;;  %s478_s2 = inlined_call_operand.vmem [shape: f32[1,128], index: 2, kind: input, shape index: {}]   ;;  %s479_s3 = inlined_call_operand.vmem [shape: f32[2,16,16], index: 3, kind: output, shape index: {}]  }
   0x1   :  { %s441_s14 = smov 0  }
   0x2 LB: > { %s25_s15 = sadd.s32 1, %s411_s13  ;;  %p353_p0 = scmp.ge.s32.totalorder %s415_s14, 1  ;;  %s415_s14 = sphi %s441_s14, %s13_s14   ;;  %s411_s13 = sphi %s439_s13, %s481_s13   ;;  %s407_s12 = sphi %s437_s12, %s480_s12  }
   0x3   : > { %p27_p1 = scmp.ge.s32.totalorder %s25_s15, 2  ;;  %p158_p2 = scmp.lt.s32.totalorder %s415_s14, 3 }
   0x5   : > { %s483_s15 = smov (%p27_p1, %s25_s15), 0  ;;  %p159_p3 = pnand %p353_p0, %p158_p2 }
   0x6   : > { %p190_p4 = scmp.lt.s32.totalorder (!%p159_p3), %s407_s12, 1 }
   0x7   : > { %162 = sbr.rel (%p159_p3) target bundleno = 154 (0x9a), region = 32 }
   0xc   : > { %s485_s12 = smov (!%p190_p4, %s407_s12), 1  ;;  %v358_v1 = vld [vmem:[%s477_s1] ss:$0 sm:$0xff]  ;;  %vm263_vm0 = vcmask 130048  }
   0xd   : > { %s362_s16 = sshll.u32 %s485_s12, 3  ;;  %v359_v4 = vld [vmem:[%s478_s2] ss:$0 sm:$0xff]  ;;  %s363_s24 = sshll.u32 %s485_s12, 4 }
   0xe   : > { %s197_s19 = scalar_lea.vmem %s476_s0, %s362_s16  ;;  %s206_s27 = scalar_lea.vmem %s479_s3, %s363_s24 }
   0xf   : > { %v365_v0 = vld [vmem:[%s197_s19] sm:$0xff]  }
  0x10   : > { %v366_v2 = vunpack.c.l.bf16 %v365_v0  ;;  %v367_v3 = vunpack.c.h.bf16 %v365_v0 }
  0x12   : > { %v218_v5 = vmul.f32 %v366_v2, %v358_v1  ;;  %v219_v6 = vmul.f32 %v367_v3, %v358_v1 }
  0x14   : > { %v227_v7 = vadd.f32 %v359_v4, %v218_v5  ;;  %v228_v8 = vadd.f32 %v359_v4, %v219_v6 }
  0x16   : > { %v229_v9 = vmax.f32 %v227_v7, 0.0  ;;  %v230_v10 = vmax.f32 %v228_v8, 0.0 }
  0x18   : > { %231 = vxpose.xlu0.b32.start [1/2] (short) (narrow) %v229_v9, 16 }
  0x1c   : > { %232 = vxpose.xlu0.b32.end [2/2] (short) (narrow) %v230_v10, 16 }
  0x94   : > { %v247_v11 = vpop.trf.xlu0 }
  0x95   : > { %264 = vst.msk [vmem:[%s206_s27] sm:$0xff] %vm263_vm0, %v247_v11 }
  0x98   : > { %v248_v12 = vpop.trf.xlu0 }
  0x99   : > { %265 = vst.msk [vmem:[%s206_s27 + $0x8] sm:$0xff] %vm263_vm0, %v248_v12 }
  0x9a PF: > { %s13_s14 = sadd.s32 1, %s415_s14   ;;  %s480_s12 = smov %s411_s13 }
  0x9b   : > { %p10_p5 = scmp.ge.s32.totalorder %s13_s14, 4   ;;  %s481_s13 = smov %s483_s15 }
  0x9d   :  { %12 = sbr.rel (!%p10_p5) target bundleno = 2 (0x2), region = 62 }

// kernel: upsample_edgeconv_forward.6
= control target key start
LH: loop header
LB: loop body
LE: loop exit
PB: predicated region body
PF: predicated region fallthrough
CT: control target
= control target key end

     0   :  { %s990_s30 = smov 0   ;;  %s1092_s0 = inlined_call_operand.vmem [shape: bf16[32,32], index: 0, kind: input, shape index: {}]   ;;  %s1093_s1 = inlined_call_operand.vmem [shape: bf16[32,256], index: 1, kind: input, shape index: {}]   ;;  %s1094_s2 = inlined_call_operand.vmem [shape: bf16[32,128], index: 2, kind: input, shape index: {}]   ;;  %s1095_s3 = inlined_call_operand.vmem [shape: bf16[256,128], index: 3, kind: input, shape index: {}]   ;;  %s1096_s4 = inlined_call_operand.vmem [shape: f32[1,256], index: 4, kind: input, shape index: {}]   ;;  %s1097_s5 = inlined_call_operand.vmem [shape: f32[1,256], index: 5, kind: input, shape index: {}]   ;;  %s1098_s6 = inlined_call_operand.vmem [shape: f32[1,128], index: 6, kind: input, shape index: {}]   ;;  %s1099_s7 = inlined_call_operand.vmem [shape: bf16[32,128], index: 7, kind: output, shape index: {0}]   ;;  %s1100_s8 = inlined_call_operand.vmem [shape: f32[2,1,128], index: 8, kind: output, shape index: {1}]   ;;  %s1101_s9 = inlined_call_operand.vmem [shape: f32[2,1,128], index: 9, kind: output, shape index: {2}]  }
   0x1 LB: > { %s996_s10 = sadd.s32 4294967295, %s936_s30   ;;  %p827_p0 = scmp.ge.s32.totalorder %s936_s30, 1  ;;  %s936_s30 = sphi %s990_s30, %s20_s30  }
   0x2   : > { %p305_p1 = scmp.lt.s32.totalorder %s936_s30, 3 }
   0x4   : > { %p306_p2 = pnand %p827_p0, %p305_p1 }
   0x5   : > { %s828_s17 = sshll.u32 (!%p306_p2), %s996_s10, 1  ;;  %p372_p4 = scmp.lt.s32.totalorder (!%p306_p2), %s996_s10, 1 }
   0x6   : > { %309 = sbr.rel (%p306_p2) target bundleno = 266 (0x10a), region = 48  ;;  %p354_p3 = scmp.lt.s32.totalorder (!%p306_p2), %s828_s17, 3 }
   0xb   : > { %v911_v0 = vld [vmem:[%s1095_s3 + $0x78] sm:$0xff]   ;;  %v938_v2 = vmov 0.0   ;;  %v913_v3 = vld [vmem:[%s1095_s3 + $0x70] sm:$0xff]   ;;  %vm939_vm0 = vmmov 0   ;;  %v915_v5 = vld [vmem:[%s1095_s3 + $0x68] sm:$0xff]   ;;  %v387_v7 = vlaneseq  ;;  %s1103_s17 = smov (!%p354_p3, %s828_s17), 3 }
   0xc   : > { %v912_v1 = vld [vmem:[%s1095_s3 + $0x38] sm:$0xff]   ;;  %893 = vmatprep.subr.bf16.mxu1 %v938_v2  ;;  %868 = vmatprep.subr.bf16.mxu0 %v911_v0  ;;  %v914_v4 = vld [vmem:[%s1095_s3 + $0x30] sm:$0xff]   ;;  %v916_v6 = vld [vmem:[%s1095_s3 + $0x28] sm:$0xff]   ;;  %s829_s13 = sshll.u32 %s1103_s17, 2  ;;  %s860_s14 = sshll.u32 %s1103_s17, 3  ;;  %vm623_vm1 = vcmask 261120  }
   0xd   : > { %897 = vmatprep.mubr.msk.bf16.mxu1 %vm939_vm0, %v938_v2  ;;  %869 = vmatpush3.bf16.msra.mxu0 %v912_v1  ;;  %v917_v8 = vld [vmem:[%s1095_s3 + $0x60] sm:$0xff]   ;;  %v919_v10 = vld [vmem:[%s1095_s3 + $0x58] sm:$0xff]   ;;  %v388_v11 = vshrl.u32 %v387_v7, 7  ;;  %v923_v12 = vld [vmem:[%s1094_s2 + $0x8] sm:$0xff]   ;;  %s357_s22 = scalar_lea.vmem %s1092_s0, %s829_s13  ;;  %s364_s27 = scalar_lea.vmem %s1093_s1, %s860_s14 }
   0xe   : > { %870 = vmatprep.subr.bf16.mxu0 %v913_v3  ;;  %v918_v9 = vld [vmem:[%s1095_s3 + $0x20] sm:$0xff]   ;;  %v920_v13 = vld [vmem:[%s1095_s3 + $0x18] sm:$0xff]   ;;  %894 = vmatpush3.bf16.msra.mxu1 %v923_v12  ;;  %v921_v15 = vld [vmem:[%s1095_s3 + $0x50] sm:$0xff]   ;;  %s370_s29 = scalar_lea.vmem %s1099_s7, %s829_s13  ;;  %s1105_s10 = smov (!%p372_p4, %s996_s10), 1 }
   0xf   : > { %895 = vmatprep.subr.bf16.mxu1 %v938_v2  ;;  %v926_v14 = vld [vmem:[%s1094_s2] sm:$0xff]   ;;  %v389_v16 = vsub.s32 0, %v388_v11  ;;  %v922_v17 = vld [vmem:[%s1095_s3 + $0x10] sm:$0xff]   ;;  %v393_v18 = vsub.s32 1, %v388_v11  ;;  %v380_v21 = vld [vmem:[%s364_s27 + $0x8] sm:$0xff]  ;;  %s374_s13 = scalar_lea.vmem %s1100_s8, %s1105_s10  ;;  %s377_s16 = scalar_lea.vmem %s1101_s9, %s1105_s10 }
  0x10   : > { %v929_v19 = vld [vmem:[%s357_s22] sm:$0xff]   ;;  %v924_v23 = vld [vmem:[%s1095_s3 + $0x48] sm:$0xff]   ;;  %v383_v26 = vunpack.c.l.bf16 %v380_v21  ;;  %v384_v27 = vunpack.c.h.bf16 %v380_v21 }
  0x11   : > { %871 = vmatpush3.bf16.msra.mxu0 %v914_v4  ;;  %v379_v20 = vld [vmem:[%s364_s27] sm:$0xff]  ;;  %v925_v33 = vld [vmem:[%s1095_s3 + $0x8] sm:$0xff]  }
  0x12   : > { %872 = vmatprep.subr.bf16.mxu0 %v915_v5  ;;  %896 = vmatpush3.bf16.msra.mxu1 %v926_v14  ;;  %v385_v22 = vld [vmem:[%s1096_s4] sm:$0x3]  ;;  %v381_v24 = vunpack.c.l.bf16 %v379_v20  ;;  %v382_v25 = vunpack.c.h.bf16 %v379_v20 }
  0x13   : > { %v401_v28 = vld [vmem:[%s1097_s5] sm:$0x3]  ;;  %v390_v29 = vrot.slane %v385_v22, %v389_v16  ;;  %v394_v30 = vrot.slane %v385_v22, %v393_v18 }
  0x14   : > { %v406_v31 = vrot.slane %v401_v28, %v389_v16  ;;  %v410_v32 = vrot.slane %v401_v28, %v393_v18  ;;  %v927_v38 = vld [vmem:[%s1095_s3 + $0x40] sm:$0xff]  }
  0x15   : > { %873 = vmatpush3.bf16.msra.mxu0 %v916_v6  ;;  %898 = vmatmul.mubr.msk.bf16.vlgmr.msra.gmra.mxu1 %vm623_vm1, %v929_v19  ;;  %v398_v34 = vmul.f32 %v394_v30, %v382_v25  ;;  %v400_v35 = vmul.f32 %v394_v30, %v384_v27  ;;  %v397_v36 = vmul.f32 %v390_v29, %v381_v24  ;;  %v928_v43 = vld [vmem:[%s1095_s3] sm:$0xff]  }
  0x16   : > { %874 = vmatprep.subr.bf16.mxu0 %v917_v8  ;;  %v399_v37 = vmul.f32 %v390_v29, %v383_v26  ;;  %v855_v63 = vld [vmem:[%s1098_s6] ss:$0 sm:$0xff] }
  0x17   : > { %v414_v39 = vadd.f32 %v410_v32, %v398_v34  ;;  %v416_v40 = vadd.f32 %v410_v32, %v400_v35  ;;  %v413_v41 = vadd.f32 %v406_v31, %v397_v36 }
  0x18   : > { %v415_v42 = vadd.f32 %v406_v31, %v399_v37 }
  0x19   : > { %875 = vmatpush3.bf16.msra.mxu0 %v918_v9  ;;  %vm418_vm2 = vcmp.ge.f32.partialorder %v414_v39, 0.0  ;;  %vm420_vm3 = vcmp.ge.f32.partialorder %v416_v40, 0.0  ;;  %v422_v44 = vmul.f32 0.01, %v414_v39  ;;  %v424_v45 = vmul.f32 0.01, %v416_v40 }
  0x1a   : > { %876 = vmatprep.subr.bf16.mxu0 %v919_v10  ;;  %vm417_vm4 = vcmp.ge.f32.partialorder %v413_v41, 0.0  ;;  %vm419_vm5 = vcmp.ge.f32.partialorder %v415_v42, 0.0  ;;  %v421_v46 = vmul.f32 0.01, %v413_v41  ;;  %v423_v47 = vmul.f32 0.01, %v415_v42 }
  0x1b   : > { %v426_v48 = vsel %vm418_vm2, %v414_v39, %v422_v44  ;;  %v428_v49 = vsel %vm420_vm3, %v416_v40, %v424_v45 }
  0x1c   : > { %v430_v50 = vpack.c.bf16 %v428_v49, %v426_v48  ;;  %v425_v51 = vsel %vm417_vm4, %v413_v41, %v421_v46  ;;  %v427_v52 = vsel %vm419_vm5, %v415_v42, %v423_v47 }
  0x1d   : > { %877 = vmatpush3.bf16.msra.mxu0 %v920_v13  ;;  %v429_v53 = vpack.c.bf16 %v427_v52, %v425_v51 }
  0x1e   : > { %878 = vmatprep.subr.bf16.mxu0 %v921_v15  ;;  %597 = vmatprep.mubr.bf16.mxu0 %v430_v50 }
  0x21   : > { %879 = vmatpush3.bf16.msra.mxu0 %v922_v17 }
  0x22   : > { %880 = vmatprep.subr.bf16.mxu0 %v924_v23 }
  0x25   : > { %881 = vmatpush3.bf16.msra.mxu0 %v925_v33 }
  0x26   : > { %882 = vmatprep.subr.bf16.mxu0 %v927_v38 }
  0x29   : > { %883 = vmatpush3.bf16.msra.mxu0 %v928_v43 }
  0x2c   : > { %598 = vmatmul.mubr.bf16.vlgmr.msra.gmra.mxu0 %v429_v53 }
  0xd5   : > { %v661_v54 = vpop.f32.mrf.mxu1 }
  0xd7   : > { %v899_v55 = vpop.f32.mrf.mxu1 }
  0xd9   : > { %v664_v56 = vpop.f32.mrf.mxu1 }
  0xdb   : > { %v900_v57 = vpop.f32.mrf.mxu1 }
  0xec   : > { %v884_v58 = vpop.f32.mrf.mxu0 }
  0xee   : > { %v885_v59 = vpop.f32.mrf.mxu0 }
  0xef   : > { %v886_v60 = vadd.f32 %v885_v59, %v884_v58 }
  0xf0   : > { %v887_v61 = vpop.f32.mrf.mxu0 }
  0xf1   : > { %v662_v62 = vadd.f32 %v886_v60, %v661_v54 }
  0xf2   : > { %v888_v0 = vpop.f32.mrf.mxu0 }
  0xf3   : > { %v889_v1 = vadd.f32 %v888_v0, %v887_v61  ;;  %v675_v2 = vadd.f32 %v855_v63, %v662_v62 }
  0xf5   : > { %v665_v3 = vadd.f32 %v889_v1, %v664_v56  ;;  %v695_v5 = vmul.f32 %v675_v2, %v675_v2 }
  0xf7   : > { %v676_v4 = vadd.f32 %v855_v63, %v665_v3 }
  0xf9   : > { %v866_v6 = vpack.c.bf16 %v676_v4, %v675_v2  ;;  %v687_v7 = vadd.f32 %v676_v4, %v675_v2  ;;  %v696_v8 = vmul.f32 %v676_v4, %v676_v4 }
  0xfb   : > { %867 = vst [vmem:[%s370_s29] sm:$0xff] %v866_v6   ;;  %v688_v9 = vrot.slane %v687_v7, 4  ;;  %v697_v10 = vadd.f32 %v696_v8, %v695_v5 }
  0xfd   : > { %v689_v11 = vadd.f32 %v688_v9, %v687_v7  ;;  %v698_v12 = vrot.slane %v697_v10, 4 }
  0xff   : > { %v690_v13 = vrot.slane %v689_v11, 2  ;;  %v699_v14 = vadd.f32 %v698_v12, %v697_v10 }
 0x101   : > { %v691_v15 = vadd.f32 %v690_v13, %v689_v11  ;;  %v700_v16 = vrot.slane %v699_v14, 2 }
 0x103   : > { %v692_v17 = vrot.slane %v691_v15, 1  ;;  %v701_v18 = vadd.f32 %v700_v16, %v699_v14 }
 0x105   : > { %v693_v19 = vadd.f32 %v692_v17, %v691_v15  ;;  %v702_v20 = vrot.slane %v701_v18, 1 }
 0x107   : > { %694 = vst [vmem:[%s374_s13] sm:$0x1] %v693_v19  ;;  %v703_v21 = vadd.f32 %v702_v20, %v701_v18 }
 0x109   : > { %704 = vst [vmem:[%s377_s16] sm:$0x1] %v703_v21 }
 0x10a PF: > { %s20_s30 = sadd.s32 1, %s936_s30  }
 0x10b   : > { %p17_p5 = scmp.ge.s32.totalorder %s20_s30, 4  }
 0x10d   :  { %19 = sbr.rel (!%p17_p5) target bundleno = 1 (0x1), region = 105 }

</bundles_post_ra>
